<compile_context>
chip_gen: v5e
topology: v5e:2x2
jax: 0.10.0
libtpu: 0.0.40
codegen_flags: <defaults>
</compile_context>

<pallas_src>
import functools

import numpy as np
import jax
import jax.numpy as jnp
from jax.experimental import pallas as pl
from jax.experimental.pallas import tpu as pltpu


def fuzzy_kernel(x_ref, w_ref, b_ref, out_ref, *, size_in):
    # x_ref:   (tile_b, D)     f32  — raw input tile (cast to bf16 here, MXU op only)
    # w_ref:   (D, D, tile_j)  bf16 — w[d, k, j] = A[j, d, k]
    # b_ref:   (D, tile_j)     f32  — bias[d, j] = centroids[j, d]  (folded ones-column)
    # out_ref: (tile_b, tile_j)     — membership values for this (batch, J) tile
    x = x_ref[...].astype(jnp.bfloat16)
    acc = jnp.zeros(out_ref.shape, jnp.float32)
    for d in range(size_in):                       # D is small (8): full unroll is fine
        m = jnp.dot(x, w_ref[d], preferred_element_type=jnp.float32)
        m = m + b_ref[d:d + 1, :]                  # sublane-broadcast centroid row (f32)
        acc = acc + m * m                          # 128-lane-aligned VPU square-accumulate
    out_ref[...] = jnp.exp(-jnp.sqrt(acc)).astype(out_ref.dtype)


def get_scales_and_rot(scales, rots):
    """JAX equivalent of FuzzyLayer.get_scales_and_rot (parameter glue)."""
    A = jax.vmap(jnp.diag)(scales)  # (J, D, D)
    for i, r in enumerate(rots):
        upper = jax.vmap(lambda v, k=i + 1: jnp.diag(v, k=k))(r)
        A = A + upper + jnp.swapaxes(upper, -1, -2)
    return A


def _round_up(v, m):
    return ((v + m - 1) // m) * m


def fuzzy_layer_forward(x, scales, rots, centroids, *, tile_b=512, tile_j=512,
                        out_dtype=jnp.float32):
    size_out, size_in = scales.shape
    batch = x.shape[0]
    j_pad = _round_up(size_out, 128)                     # lane-dense output columns
    tile_j = min(_round_up(tile_j, 128), j_pad)
    tile_b = min(_round_up(tile_b, 8), _round_up(batch, 8))

    # --- parameter glue (pure JAX) ---
    A = get_scales_and_rot(scales, rots)                 # (J, D, D)
    # w[d, k, j] = A[j, d, k]; pad J to a 128-multiple so every block is lane-dense.
    w = jnp.transpose(A, (1, 2, 0))                      # (D, D, J)
    w = jnp.pad(w, ((0, 0), (0, 0), (0, j_pad - size_out))).astype(jnp.bfloat16)
    # bias[d, j] = centroids[j, d, 0]  (kept in f32: added after the f32-accumulated dot)
    bias = jnp.pad(centroids[..., 0].T,
                   ((0, 0), (0, j_pad - size_out))).astype(jnp.float32)

    nb = pl.cdiv(batch, tile_b)                          # ragged batch via grid remainder
    nj = j_pad // tile_j

    out_bytes = jnp.dtype(out_dtype).itemsize
    block_bytes = (
        2 * tile_b * size_in * 4                         # x blocks (double-buffered, f32)
        + 2 * size_in * size_in * tile_j * 2             # w blocks (bf16)
        + 2 * size_in * tile_j * 4                       # bias blocks (f32)
        + 2 * tile_b * tile_j * out_bytes                # out blocks
        + 2 * tile_b * tile_j * 4)                       # in-kernel f32 acc / partial
    vmem_limit = int(min(max(2 * block_bytes, 32 * 2**20), 64 * 2**20))

    cost = pl.CostEstimate(
        flops=batch * j_pad * size_in * (2 * size_in + 3),
        transcendentals=2 * batch * j_pad,               # sqrt + exp
        bytes_accessed=batch * size_in * 4 + int(w.size) * 2 + int(bias.size) * 4
        + batch * j_pad * out_bytes,
    )

    kernel = functools.partial(fuzzy_kernel, size_in=size_in)

    out = pl.pallas_call(
        kernel,
        out_shape=jax.ShapeDtypeStruct((batch, j_pad), out_dtype),
        grid_spec=pltpu.PrefetchScalarGridSpec(
            num_scalar_prefetch=0,
            grid=(nb, nj),
            in_specs=[
                pl.BlockSpec((tile_b, size_in), lambda i, j: (i, 0)),
                pl.BlockSpec((size_in, size_in, tile_j), lambda i, j: (0, 0, j)),
                pl.BlockSpec((size_in, tile_j), lambda i, j: (0, j)),
            ],
            out_specs=pl.BlockSpec((tile_b, tile_j), lambda i, j: (i, j)),
        ),
        compiler_params=pltpu.CompilerParams(
            dimension_semantics=("parallel", "parallel"),
            vmem_limit_bytes=vmem_limit),
        cost_estimate=cost,
    )(x.astype(jnp.float32), w, bias)
    return out[:, :size_out]


def fuzzy_layer_reference(x, scales, rots, centroids):
    """Pure-JAX f32 transcription of the PyTorch forward, for validation."""
    A = get_scales_and_rot(scales, rots)
    A_ext = jnp.concatenate([A, centroids], axis=2)              # (J, D, D+1)
    ext_x = jnp.concatenate(
        [x, jnp.ones((x.shape[0], 1), dtype=x.dtype)], axis=1)   # (B, D+1)
    mul = jnp.einsum("jdk,bk->jdb", A_ext, ext_x)                # (J, D, B)
    exponents = jnp.sqrt(jnp.sum(mul * mul, axis=1))             # (J, B)
    return jnp.exp(-exponents).T                                 # (B, J)


if __name__ == "__main__":
    size_in = 8     # input feature dim (D)
    size_out = 32   # number of fuzzy memberships (J)
    batch = 500     # ragged on purpose: 4 batch tiles of 128, last one partial

    key = jax.random.PRNGKey(0)
    kx, kc = jax.random.split(key)

    # Deterministic parameter init mirroring FuzzyLayer.from_dimensions:
    #   centers ~ N(0,1), scales = 1, rots = 0
    x = jax.random.normal(kx, (batch, size_in), dtype=jnp.float32)
    initial_centers = jax.random.normal(kc, (size_out, size_in), dtype=jnp.float32)
    scales = jnp.ones((size_out, size_in), dtype=jnp.float32)
    rots = [jnp.zeros((size_out, size_in - i - 1), dtype=jnp.float32)
            for i in range(size_in - 1)]
    centroids = initial_centers.reshape(size_out, size_in, 1)

    # tile_b=128 at this small demo batch -> grid (4, 1): exercises the multi-step
    # parallel grid and the ragged last block.  Production sizes should use the
    # tile_b=512 default (sweep 512-1024) and larger J with tile_j-blocked w.
    out = jax.block_until_ready(
        fuzzy_layer_forward(x, scales, rots, centroids, tile_b=128, tile_j=128))
    ref = jax.block_until_ready(fuzzy_layer_reference(x, scales, rots, centroids))

    # bf16 MXU operands with f32 accumulation -> small deviation vs the f32 reference.
    np.testing.assert_allclose(np.asarray(out), np.asarray(ref), rtol=1e-2, atol=1e-2)

    print("KERNEL_OK")
</pallas_src>

<mosaic_0001>
module attributes {stable_mosaic.version = 11 : i64} {
  func.func @fuzzy_kernel(%arg0: i32, %arg1: i32, %arg2: memref<128x8xf32, #tpu.memory_space<vmem>>, %arg3: memref<8x8x128xbf16, #tpu.memory_space<vmem>>, %arg4: memref<8x128xf32, #tpu.memory_space<vmem>>, %arg5: memref<128x128xf32, #tpu.memory_space<vmem>>) attributes {dimension_semantics = [#tpu.dimension_semantics<parallel>, #tpu.dimension_semantics<parallel>], iteration_bounds = array<i64: 4, 1>, scalar_prefetch = 0 : i64, scratch_operands = 0 : i64, tpu.core_type = #tpu.core_type<tc>, window_params = [{transform_indices = @transform_0, window_bounds = array<i64: 128, 8>}, {transform_indices = @transform_1, window_bounds = array<i64: 8, 8, 128>}, {transform_indices = @transform_2, window_bounds = array<i64: 8, 128>}, {transform_indices = @transform_3, window_bounds = array<i64: 128, 128>}]} {
    %c0 = arith.constant 0 : index
    %c0_0 = arith.constant 0 : index
    %0 = vector.load %arg2[%c0, %c0_0] : memref<128x8xf32, #tpu.memory_space<vmem>>, vector<128x8xf32>
    %1 = arith.truncf %0 : vector<128x8xf32> to vector<128x8xbf16>
    %cst = arith.constant 0.000000e+00 : f32
    %2 = vector.broadcast %cst : f32 to vector<128x128xf32>
    %c0_1 = arith.constant 0 : index
    %c0_2 = arith.constant 0 : index
    %c0_3 = arith.constant 0 : index
    %3 = vector.load %arg3[%c0_1, %c0_2, %c0_3] : memref<8x8x128xbf16, #tpu.memory_space<vmem>>, vector<1x8x128xbf16>
    %4 = vector.shape_cast %3 : vector<1x8x128xbf16> to vector<8x128xbf16>
    %cst_4 = arith.constant dense<0.000000e+00> : vector<128x128xf32>
    %5 = tpu.matmul %1, %4, %cst_4 {dimension_numbers = #tpu.dot_dimension_numbers<[1], [0], [0], [1], [0, 0, 1, 1], [], []>} : vector<128x8xbf16>, vector<8x128xbf16>, vector<128x128xf32> -> vector<128x128xf32>
    %c0_5 = arith.constant 0 : index
    %c0_6 = arith.constant 0 : index
    %6 = vector.load %arg4[%c0_5, %c0_6] : memref<8x128xf32, #tpu.memory_space<vmem>>, vector<1x128xf32>
    %7 = vector.broadcast %6 : vector<1x128xf32> to vector<128x128xf32>
    %8 = arith.addf %5, %7 : vector<128x128xf32>
    %9 = arith.mulf %8, %8 : vector<128x128xf32>
    %10 = arith.addf %2, %9 : vector<128x128xf32>
    %c1 = arith.constant 1 : index
    %c0_7 = arith.constant 0 : index
    %c0_8 = arith.constant 0 : index
    %11 = vector.load %arg3[%c1, %c0_7, %c0_8] : memref<8x8x128xbf16, #tpu.memory_space<vmem>>, vector<1x8x128xbf16>
    %12 = vector.shape_cast %11 : vector<1x8x128xbf16> to vector<8x128xbf16>
    %cst_9 = arith.constant dense<0.000000e+00> : vector<128x128xf32>
    %13 = tpu.matmul %1, %12, %cst_9 {dimension_numbers = #tpu.dot_dimension_numbers<[1], [0], [0], [1], [0, 0, 1, 1], [], []>} : vector<128x8xbf16>, vector<8x128xbf16>, vector<128x128xf32> -> vector<128x128xf32>
    %c1_10 = arith.constant 1 : index
    %c0_11 = arith.constant 0 : index
    %14 = vector.load %arg4[%c1_10, %c0_11] : memref<8x128xf32, #tpu.memory_space<vmem>>, vector<1x128xf32>
    %15 = vector.broadcast %14 : vector<1x128xf32> to vector<128x128xf32>
    %16 = arith.addf %13, %15 : vector<128x128xf32>
    %17 = arith.mulf %16, %16 : vector<128x128xf32>
    %18 = arith.addf %10, %17 : vector<128x128xf32>
    %c2 = arith.constant 2 : index
    %c0_12 = arith.constant 0 : index
    %c0_13 = arith.constant 0 : index
    %19 = vector.load %arg3[%c2, %c0_12, %c0_13] : memref<8x8x128xbf16, #tpu.memory_space<vmem>>, vector<1x8x128xbf16>
    %20 = vector.shape_cast %19 : vector<1x8x128xbf16> to vector<8x128xbf16>
    %cst_14 = arith.constant dense<0.000000e+00> : vector<128x128xf32>
    %21 = tpu.matmul %1, %20, %cst_14 {dimension_numbers = #tpu.dot_dimension_numbers<[1], [0], [0], [1], [0, 0, 1, 1], [], []>} : vector<128x8xbf16>, vector<8x128xbf16>, vector<128x128xf32> -> vector<128x128xf32>
    %c2_15 = arith.constant 2 : index
    %c0_16 = arith.constant 0 : index
    %22 = vector.load %arg4[%c2_15, %c0_16] : memref<8x128xf32, #tpu.memory_space<vmem>>, vector<1x128xf32>
    %23 = vector.broadcast %22 : vector<1x128xf32> to vector<128x128xf32>
    %24 = arith.addf %21, %23 : vector<128x128xf32>
    %25 = arith.mulf %24, %24 : vector<128x128xf32>
    %26 = arith.addf %18, %25 : vector<128x128xf32>
    %c3 = arith.constant 3 : index
    %c0_17 = arith.constant 0 : index
    %c0_18 = arith.constant 0 : index
    %27 = vector.load %arg3[%c3, %c0_17, %c0_18] : memref<8x8x128xbf16, #tpu.memory_space<vmem>>, vector<1x8x128xbf16>
    %28 = vector.shape_cast %27 : vector<1x8x128xbf16> to vector<8x128xbf16>
    %cst_19 = arith.constant dense<0.000000e+00> : vector<128x128xf32>
    %29 = tpu.matmul %1, %28, %cst_19 {dimension_numbers = #tpu.dot_dimension_numbers<[1], [0], [0], [1], [0, 0, 1, 1], [], []>} : vector<128x8xbf16>, vector<8x128xbf16>, vector<128x128xf32> -> vector<128x128xf32>
    %c3_20 = arith.constant 3 : index
    %c0_21 = arith.constant 0 : index
    %30 = vector.load %arg4[%c3_20, %c0_21] : memref<8x128xf32, #tpu.memory_space<vmem>>, vector<1x128xf32>
    %31 = vector.broadcast %30 : vector<1x128xf32> to vector<128x128xf32>
    %32 = arith.addf %29, %31 : vector<128x128xf32>
    %33 = arith.mulf %32, %32 : vector<128x128xf32>
    %34 = arith.addf %26, %33 : vector<128x128xf32>
    %c4 = arith.constant 4 : index
    %c0_22 = arith.constant 0 : index
    %c0_23 = arith.constant 0 : index
    %35 = vector.load %arg3[%c4, %c0_22, %c0_23] : memref<8x8x128xbf16, #tpu.memory_space<vmem>>, vector<1x8x128xbf16>
    %36 = vector.shape_cast %35 : vector<1x8x128xbf16> to vector<8x128xbf16>
    %cst_24 = arith.constant dense<0.000000e+00> : vector<128x128xf32>
    %37 = tpu.matmul %1, %36, %cst_24 {dimension_numbers = #tpu.dot_dimension_numbers<[1], [0], [0], [1], [0, 0, 1, 1], [], []>} : vector<128x8xbf16>, vector<8x128xbf16>, vector<128x128xf32> -> vector<128x128xf32>
    %c4_25 = arith.constant 4 : index
    %c0_26 = arith.constant 0 : index
    %38 = vector.load %arg4[%c4_25, %c0_26] : memref<8x128xf32, #tpu.memory_space<vmem>>, vector<1x128xf32>
    %39 = vector.broadcast %38 : vector<1x128xf32> to vector<128x128xf32>
    %40 = arith.addf %37, %39 : vector<128x128xf32>
    %41 = arith.mulf %40, %40 : vector<128x128xf32>
    %42 = arith.addf %34, %41 : vector<128x128xf32>
    %c5 = arith.constant 5 : index
    %c0_27 = arith.constant 0 : index
    %c0_28 = arith.constant 0 : index
    %43 = vector.load %arg3[%c5, %c0_27, %c0_28] : memref<8x8x128xbf16, #tpu.memory_space<vmem>>, vector<1x8x128xbf16>
    %44 = vector.shape_cast %43 : vector<1x8x128xbf16> to vector<8x128xbf16>
    %cst_29 = arith.constant dense<0.000000e+00> : vector<128x128xf32>
    %45 = tpu.matmul %1, %44, %cst_29 {dimension_numbers = #tpu.dot_dimension_numbers<[1], [0], [0], [1], [0, 0, 1, 1], [], []>} : vector<128x8xbf16>, vector<8x128xbf16>, vector<128x128xf32> -> vector<128x128xf32>
    %c5_30 = arith.constant 5 : index
    %c0_31 = arith.constant 0 : index
    %46 = vector.load %arg4[%c5_30, %c0_31] : memref<8x128xf32, #tpu.memory_space<vmem>>, vector<1x128xf32>
    %47 = vector.broadcast %46 : vector<1x128xf32> to vector<128x128xf32>
    %48 = arith.addf %45, %47 : vector<128x128xf32>
    %49 = arith.mulf %48, %48 : vector<128x128xf32>
    %50 = arith.addf %42, %49 : vector<128x128xf32>
    %c6 = arith.constant 6 : index
    %c0_32 = arith.constant 0 : index
    %c0_33 = arith.constant 0 : index
    %51 = vector.load %arg3[%c6, %c0_32, %c0_33] : memref<8x8x128xbf16, #tpu.memory_space<vmem>>, vector<1x8x128xbf16>
    %52 = vector.shape_cast %51 : vector<1x8x128xbf16> to vector<8x128xbf16>
    %cst_34 = arith.constant dense<0.000000e+00> : vector<128x128xf32>
    %53 = tpu.matmul %1, %52, %cst_34 {dimension_numbers = #tpu.dot_dimension_numbers<[1], [0], [0], [1], [0, 0, 1, 1], [], []>} : vector<128x8xbf16>, vector<8x128xbf16>, vector<128x128xf32> -> vector<128x128xf32>
    %c6_35 = arith.constant 6 : index
    %c0_36 = arith.constant 0 : index
    %54 = vector.load %arg4[%c6_35, %c0_36] : memref<8x128xf32, #tpu.memory_space<vmem>>, vector<1x128xf32>
    %55 = vector.broadcast %54 : vector<1x128xf32> to vector<128x128xf32>
    %56 = arith.addf %53, %55 : vector<128x128xf32>
    %57 = arith.mulf %56, %56 : vector<128x128xf32>
    %58 = arith.addf %50, %57 : vector<128x128xf32>
    %c7 = arith.constant 7 : index
    %c0_37 = arith.constant 0 : index
    %c0_38 = arith.constant 0 : index
    %59 = vector.load %arg3[%c7, %c0_37, %c0_38] : memref<8x8x128xbf16, #tpu.memory_space<vmem>>, vector<1x8x128xbf16>
    %60 = vector.shape_cast %59 : vector<1x8x128xbf16> to vector<8x128xbf16>
    %cst_39 = arith.constant dense<0.000000e+00> : vector<128x128xf32>
    %61 = tpu.matmul %1, %60, %cst_39 {dimension_numbers = #tpu.dot_dimension_numbers<[1], [0], [0], [1], [0, 0, 1, 1], [], []>} : vector<128x8xbf16>, vector<8x128xbf16>, vector<128x128xf32> -> vector<128x128xf32>
    %c7_40 = arith.constant 7 : index
    %c0_41 = arith.constant 0 : index
    %62 = vector.load %arg4[%c7_40, %c0_41] : memref<8x128xf32, #tpu.memory_space<vmem>>, vector<1x128xf32>
    %63 = vector.broadcast %62 : vector<1x128xf32> to vector<128x128xf32>
    %64 = arith.addf %61, %63 : vector<128x128xf32>
    %65 = arith.mulf %64, %64 : vector<128x128xf32>
    %66 = arith.addf %58, %65 : vector<128x128xf32>
    %67 = math.sqrt %66 : vector<128x128xf32>
    %cst_42 = arith.constant 0.000000e+00 : f32
    %68 = vector.broadcast %cst_42 : f32 to vector<128x128xf32>
    %69 = arith.subf %68, %67 : vector<128x128xf32>
    %70 = math.exp %69 : vector<128x128xf32>
    %c0_43 = arith.constant 0 : index
    %c0_44 = arith.constant 0 : index
    %71 = vector.load %arg5[%c0_43, %c0_44] : memref<128x128xf32, #tpu.memory_space<vmem>>, vector<128x128xf32>
    tpu.vector_store %arg5[%c0_43, %c0_44], %70 {strides = array<i32>} : memref<128x128xf32, #tpu.memory_space<vmem>>, vector<128x128xf32>,
    return
  }
  func.func @transform_0(%arg0: i32, %arg1: i32) -> (i32, i32) {
    %c0_i32 = arith.constant 0 : i32
    %c0_i32_0 = arith.constant 0 : i32
    return %arg0, %c0_i32 : i32, i32
  }
  func.func @transform_1(%arg0: i32, %arg1: i32) -> (i32, i32, i32) {
    %c0_i32 = arith.constant 0 : i32
    %c0_i32_0 = arith.constant 0 : i32
    %c0_i32_1 = arith.constant 0 : i32
    return %c0_i32, %c0_i32_0, %arg1 : i32, i32, i32
  }
  func.func @transform_2(%arg0: i32, %arg1: i32) -> (i32, i32) {
    %c0_i32 = arith.constant 0 : i32
    %c0_i32_0 = arith.constant 0 : i32
    return %c0_i32, %arg1 : i32, i32
  }
  func.func @transform_3(%arg0: i32, %arg1: i32) -> (i32, i32) {
    %c0_i32 = arith.constant 0 : i32
    return %arg0, %arg1 : i32, i32
  }
}

</mosaic_0001>

<bundles_post_ra>
// kernel: tpu_custom_call.1
= control target key start
LH: loop header
LB: loop body
LE: loop exit
PB: predicated region body
PF: predicated region fallthrough
CT: control target
= control target key end

     0   :  { %8 = vsyncpa [#allocation3], 0  ;;  %s2403_s0 = inlined_call_operand.vmem [shape: f32[500,8], index: 0, kind: input, shape index: {}]   ;;  %s2404_s1 = inlined_call_operand.vmem [shape: bf16[8,8,128], index: 1, kind: input, shape index: {}]   ;;  %s2405_s2 = inlined_call_operand.vmem [shape: f32[8,128], index: 2, kind: input, shape index: {}]   ;;  %s2406_s3 = inlined_call_operand.hbm [shape: f32[500,128], index: 3, kind: output, shape index: {}]  }
   0x1   :  { %10 = vsyncpa [#allocation3 + $0x1], 0  ;;  %s1713_s12 = smov 0   ;;  %s1715_s13 = smov 0  }
   0x2   :  { %s1717_s14 = smov 0   ;;  %s1719_s15 = smov 0  }
   0x3   :  { %s1721_s16 = smov 0   ;;  %s1723_s17 = smov 0  }
   0x4 LB: > { %s1380_s18 = sadd.s32 4294967295, %s1688_s17   ;;  %s1381_s19 = sadd.s32 4294967294, %s1688_s17   ;;  %s1688_s17 = sphi %s1723_s17, %s16_s17   ;;  %s1684_s16 = sphi %s1721_s16, %s2414_s16   ;;  %s1680_s15 = sphi %s1719_s15, %s2413_s15   ;;  %s1676_s14 = sphi %s1717_s14, %s2412_s14   ;;  %s1672_s13 = sphi %s1715_s13, %s2411_s13   ;;  %s1668_s12 = sphi %s1713_s12, %s2410_s12  }
   0x5   : > { %s28_s20 = sadd.s32 1, %s1684_s16  ;;  %s115_s21 = sadd.s32 1, %s1676_s14 }
   0x6   : > { %p30_p0 = scmp.ge.s32.totalorder %s28_s20, 4  ;;  %p125_p1 = scmp.ne.s32.totalorder %s1676_s14, %s1672_s13 }
   0x7   : > { %p126_p2 = scmp.eq.s32.totalorder %s1380_s18, 3  ;;  %p131_p3 = scmp.ne.s32.totalorder %s1672_s13, %s1668_s12 }
   0x8   : > { %s2416_s20 = smov (%p30_p0, %s28_s20), 0  ;;  %p132_p5 = scmp.eq.s32.totalorder %s1381_s19, 3 }
   0x9   : > { %p1753_p4 = por %p126_p2, %p125_p1  ;;  %s110_s23 = ssub.s32 %s1684_s16, %s2416_s20 }
   0xa   : > { %p1386_p6 = scmp.ge.s32.totalorder %s1688_s17, 1  ;;  %p113_p7 = scmp.eq.s32.totalorder %s110_s23, 0 }
   0xb   : > { %p1760_p8 = por %p132_p5, %p131_p3  ;;  %p181_p9 = scmp.lt.s32.totalorder %s1688_s17, 5 }
   0xc   : > { %s1766_s25 = scalar_select %p113_p7, %s1676_s14, %s115_s21  }
   0xd   : > { %p182_p10 = pnand %p1386_p6, %p181_p9 }
   0xe   : > { %s1775_s30 = sshll.u32 (!%p182_p10), %s1680_s15, 4  ;;  %s214_s19 = sand.u32 (!%p182_p10), 1, %s1672_s13  }
   0xf   : > { %185 = sbr.rel (%p182_p10) target bundleno = 482 (0x1e2), region = 32  ;;  %p222_p11 = scmp.lt.s32.totalorder (!%p182_p10), %s1775_s30, 62 }
  0x10   : > { %s1387_s6 = sshll.u32 (!%p182_p10), %s214_s19, 7  ;;  %s2337_s8 = scalar_lea.sflag (!%p182_p10), [#allocation3], %s214_s19 }
  0x11   : > { %s2163_s7 = scalar_lea.vmem (!%p182_p10), [#allocation2], %s1387_s6 }
  0x14   : > { %v269_v0 = vld [vmem:[%s2404_s1] sm:$0xf]  ;;  %vm297_vm0 = vcmask 1043456   ;;  %v1398_v1 = vld [vmem:[%s2404_s1 + $0x4] sm:$0xf]  ;;  %s223_s21 = scalar_select %p222_p11, %s1775_s30, 62 }
  0x15   : > { %v299_v2 = vsel %vm297_vm0, %v269_v0, 0  ;;  %v387_v3 = vsel %vm297_vm0, %v1398_v1, 0  ;;  %v1407_v4 = vld [vmem:[%s2404_s1 + $0x8] sm:$0xf]  ;;  %v1416_v5 = vld [vmem:[%s2404_s1 + $0xc] sm:$0xf] }
  0x16   : > { %308 = vmatpush.bf16.msra.mxu0 %v299_v2  ;;  %396 = vmatpush.bf16.msra.mxu1 %v387_v3  ;;  %v475_v6 = vsel %vm297_vm0, %v1407_v4, 0  ;;  %v563_v7 = vsel %vm297_vm0, %v1416_v5, 0  ;;  %v1443_v8 = vld [vmem:[%s2404_s1 + $0x18] sm:$0xf]  ;;  %v1425_v10 = vld [vmem:[%s2404_s1 + $0x10] sm:$0xf] }
  0x17   : > { %484 = vmatpush.bf16.msra.mxu2 %v475_v6  ;;  %572 = vmatpush.bf16.msra.mxu3 %v563_v7  ;;  %v827_v9 = vsel %vm297_vm0, %v1443_v8, 0  ;;  %v1452_v11 = vld [vmem:[%s2404_s1 + $0x1c] sm:$0xf]  ;;  %v651_v12 = vsel %vm297_vm0, %v1425_v10, 0  ;;  %v1434_v14 = vld [vmem:[%s2404_s1 + $0x14] sm:$0xf] }
  0x18   : > { %v915_v13 = vsel %vm297_vm0, %v1452_v11, 0  ;;  %v739_v15 = vsel %vm297_vm0, %v1434_v14, 0  ;;  %s1389_s27 = sshll.u32 %s223_s21, 3  ;;  %vm272_vm1 = vcmask 64512   ;;  %v1909_v40 = vld [vmem:[%s2405_s2] ss:$0 sm:$0xff] }
  0x19   : > { %s1808_s4 = scalar_lea.vmem %s2403_s0, %s1389_s27  ;;  %v1914_v41 = vld [vmem:[%s2405_s2 + $0x1] ss:$0 sm:$0xff]  ;;  %v1929_v48 = vld [vmem:[%s2405_s2 + $0x2] ss:$0 sm:$0xff]  ;;  %v1934_v49 = vld [vmem:[%s2405_s2 + $0x3] ss:$0 sm:$0xff] }
  0x1a   : > { %660 = vmatpush.bf16.msrb.mxu0 %v651_v12  ;;  %748 = vmatpush.bf16.msrb.mxu1 %v739_v15  ;;  %v245_v16 = vld [vmem:[%s1808_s4] sm:$0xff]  ;;  %v246_v17 = vld [vmem:[%s1808_s4 + $0x8] sm:$0xff]  ;;  %v247_v19 = vld [vmem:[%s1808_s4 + $0x10] sm:$0xff]  ;;  %s1263_s9 = ssub.s32 (%p1753_p4), 63, %s1775_s30 }
  0x1b   : > { %836 = vmatpush.bf16.msrb.mxu2 %v827_v9  ;;  %924 = vmatpush.bf16.msrb.mxu3 %v915_v13  ;;  %v1812_v18 = vpack.c.bf16 %v246_v17, %v245_v16  ;;  %v248_v20 = vld [vmem:[%s1808_s4 + $0x18] sm:$0xff]  ;;  %v249_v22 = vld [vmem:[%s1808_s4 + $0x20] sm:$0xff]  ;;  %v250_v23 = vld [vmem:[%s1808_s4 + $0x28] sm:$0xff]  ;;  %p1264_p12 = scmp.lt.s32.totalorder (%p1753_p4), %s1263_s9, 16 }
  0x1c   : > { %v1824_v21 = vpack.c.bf16 %v248_v20, %v247_v19  ;;  %v1836_v24 = vpack.c.bf16 %v250_v23, %v249_v22  ;;  %v251_v25 = vld [vmem:[%s1808_s4 + $0x30] sm:$0xff]  ;;  %v252_v26 = vld [vmem:[%s1808_s4 + $0x38] sm:$0xff]  ;;  %v253_v28 = vld [vmem:[%s1808_s4 + $0x40] sm:$0xff] }
  0x1d   : > { %1390 = vmatmul.msk.bf16.vlgmr.msra.gmra.mxu0 %vm272_vm1, %v1812_v18  ;;  %1399 = vmatmul.msk.bf16.vlgmr.msra.gmra.mxu1 %vm272_vm1, %v1812_v18  ;;  %v1848_v27 = vpack.c.bf16 %v252_v26, %v251_v25  ;;  %v254_v29 = vld [vmem:[%s1808_s4 + $0x48] sm:$0xff]  ;;  %v255_v31 = vld [vmem:[%s1808_s4 + $0x50] sm:$0xff]  ;;  %v256_v32 = vld [vmem:[%s1808_s4 + $0x58] sm:$0xff] }
  0x1e   : > { %1408 = vmatmul.msk.bf16.vlgmr.msra.gmra.mxu2 %vm272_vm1, %v1812_v18  ;;  %1417 = vmatmul.msk.bf16.vlgmr.msra.gmra.mxu3 %vm272_vm1, %v1812_v18  ;;  %v1860_v30 = vpack.c.bf16 %v254_v29, %v253_v28  ;;  %v1872_v33 = vpack.c.bf16 %v256_v32, %v255_v31  ;;  %v257_v34 = vld [vmem:[%s1808_s4 + $0x60] sm:$0xff]  ;;  %v258_v35 = vld [vmem:[%s1808_s4 + $0x68] sm:$0xff]  ;;  %v259_v37 = vld [vmem:[%s1808_s4 + $0x70] sm:$0xff] }
  0x1f   : > { %v1884_v36 = vpack.c.bf16 %v258_v35, %v257_v34  ;;  %v260_v38 = vld [vmem:[%s1808_s4 + $0x78] sm:$0xff] }
  0x20   : > { %v1896_v39 = vpack.c.bf16 %v260_v38, %v259_v37 }
  0x2d   : > { %1391 = vmatmul.msk.bf16.gmra.mxu0 %vm272_vm1, %v1824_v21  ;;  %1400 = vmatmul.msk.bf16.gmra.mxu1 %vm272_vm1, %v1824_v21 }
  0x2e   : > { %1409 = vmatmul.msk.bf16.gmra.mxu2 %vm272_vm1, %v1824_v21  ;;  %1418 = vmatmul.msk.bf16.gmra.mxu3 %vm272_vm1, %v1824_v21 }
  0x3d   : > { %1392 = vmatmul.msk.bf16.gmra.mxu0 %vm272_vm1, %v1836_v24  ;;  %1401 = vmatmul.msk.bf16.gmra.mxu1 %vm272_vm1, %v1836_v24 }
  0x3e   : > { %1410 = vmatmul.msk.bf16.gmra.mxu2 %vm272_vm1, %v1836_v24  ;;  %1419 = vmatmul.msk.bf16.gmra.mxu3 %vm272_vm1, %v1836_v24 }
  0x4d   : > { %1393 = vmatmul.msk.bf16.gmra.mxu0 %vm272_vm1, %v1848_v27  ;;  %1402 = vmatmul.msk.bf16.gmra.mxu1 %vm272_vm1, %v1848_v27 }
  0x4e   : > { %1411 = vmatmul.msk.bf16.gmra.mxu2 %vm272_vm1, %v1848_v27  ;;  %1420 = vmatmul.msk.bf16.gmra.mxu3 %vm272_vm1, %v1848_v27 }
  0x5d   : > { %1394 = vmatmul.msk.bf16.gmra.mxu0 %vm272_vm1, %v1860_v30  ;;  %1403 = vmatmul.msk.bf16.gmra.mxu1 %vm272_vm1, %v1860_v30 }
  0x5e   : > { %1412 = vmatmul.msk.bf16.gmra.mxu2 %vm272_vm1, %v1860_v30  ;;  %1421 = vmatmul.msk.bf16.gmra.mxu3 %vm272_vm1, %v1860_v30 }
  0x6d   : > { %1395 = vmatmul.msk.bf16.gmra.mxu0 %vm272_vm1, %v1872_v33  ;;  %1404 = vmatmul.msk.bf16.gmra.mxu1 %vm272_vm1, %v1872_v33 }
  0x6e   : > { %1413 = vmatmul.msk.bf16.gmra.mxu2 %vm272_vm1, %v1872_v33  ;;  %1422 = vmatmul.msk.bf16.gmra.mxu3 %vm272_vm1, %v1872_v33 }
  0x7d   : > { %1396 = vmatmul.msk.bf16.gmra.mxu0 %vm272_vm1, %v1884_v36  ;;  %1405 = vmatmul.msk.bf16.gmra.mxu1 %vm272_vm1, %v1884_v36 }
  0x7e   : > { %1414 = vmatmul.msk.bf16.gmra.mxu2 %vm272_vm1, %v1884_v36  ;;  %1423 = vmatmul.msk.bf16.gmra.mxu3 %vm272_vm1, %v1884_v36 }
  0x8d   : > { %1397 = vmatmul.msk.bf16.gmra.mxu0 %vm272_vm1, %v1896_v39  ;;  %1406 = vmatmul.msk.bf16.gmra.mxu1 %vm272_vm1, %v1896_v39 }
  0x8e   : > { %1415 = vmatmul.msk.bf16.gmra.mxu2 %vm272_vm1, %v1896_v39  ;;  %1424 = vmatmul.msk.bf16.gmra.mxu3 %vm272_vm1, %v1896_v39 }
  0x9a   : > { %v310_v42 = vpop.f32.mrf.mxu0  ;;  %v398_v43 = vpop.f32.mrf.mxu1 }
  0x9b   : > { %v311_v44 = vadd.f32 %v1909_v40, %v310_v42  ;;  %v399_v45 = vadd.f32 %v1914_v41, %v398_v43 }
  0x9d   : > { %v350_v46 = vmul.f32 %v311_v44, %v311_v44  ;;  %v438_v47 = vmul.f32 %v399_v45, %v399_v45  ;;  %1426 = vmatmul.msk.bf16.vlgmr.msrb.gmra.mxu0 %vm272_vm1, %v1812_v18  ;;  %1435 = vmatmul.msk.bf16.vlgmr.msrb.gmra.mxu1 %vm272_vm1, %v1812_v18 }
  0x9e   : > { %1444 = vmatmul.msk.bf16.vlgmr.msrb.gmra.mxu2 %vm272_vm1, %v1812_v18  ;;  %1453 = vmatmul.msk.bf16.vlgmr.msrb.gmra.mxu3 %vm272_vm1, %v1812_v18 }
  0x9f   : > { %v454_v50 = vadd.f32 %v438_v47, %v350_v46 }
  0xa1   : > { %v486_v51 = vpop.f32.mrf.mxu2  ;;  %v574_v52 = vpop.f32.mrf.mxu3 }
  0xa2   : > { %v487_v53 = vadd.f32 %v1929_v48, %v486_v51  ;;  %v575_v54 = vadd.f32 %v1934_v49, %v574_v52  ;;  %v312_v55 = vpop.f32.mrf.mxu0  ;;  %v400_v56 = vpop.f32.mrf.mxu1 }
  0xa3   : > { %v313_v57 = vadd.f32 %v1909_v40, %v312_v55  ;;  %v401_v58 = vadd.f32 %v1914_v41, %v400_v56 }
  0xa4   : > { %v526_v59 = vmul.f32 %v487_v53, %v487_v53  ;;  %v614_v60 = vmul.f32 %v575_v54, %v575_v54 }
  0xa5   : > { %v351_v61 = vmul.f32 %v313_v57, %v313_v57  ;;  %v439_v62 = vmul.f32 %v401_v58, %v401_v58 }
  0xa6   : > { %v542_v63 = vadd.f32 %v526_v59, %v454_v50 }
  0xa7   : > { %v455_v0 = vadd.f32 %v439_v62, %v351_v61 }
  0xa8   : > { %v1940_v1 = vadd.f32 %v614_v60, %v542_v63 }
  0xa9   : > { %v488_v2 = vpop.f32.mrf.mxu2  ;;  %v576_v3 = vpop.f32.mrf.mxu3 }
  0xaa   : > { %v489_v4 = vadd.f32 %v1929_v48, %v488_v2  ;;  %v577_v5 = vadd.f32 %v1934_v49, %v576_v3  ;;  %v315_v6 = vpop.f32.mrf.mxu0  ;;  %v403_v7 = vpop.f32.mrf.mxu1 }
  0xab   : > { %v316_v8 = vadd.f32 %v1909_v40, %v315_v6  ;;  %v404_v9 = vadd.f32 %v1914_v41, %v403_v7 }
  0xac   : > { %v527_v10 = vmul.f32 %v489_v4, %v489_v4  ;;  %v615_v14 = vmul.f32 %v577_v5, %v577_v5 }
  0xad   : > { %v352_v11 = vmul.f32 %v316_v8, %v316_v8  ;;  %v440_v12 = vmul.f32 %v404_v9, %v404_v9  ;;  %1427 = vmatmul.msk.bf16.gmra.mxu0 %vm272_vm1, %v1824_v21  ;;  %1436 = vmatmul.msk.bf16.gmra.mxu1 %vm272_vm1, %v1824_v21 }
  0xae   : > { %v543_v13 = vadd.f32 %v527_v10, %v455_v0  ;;  %1445 = vmatmul.msk.bf16.gmra.mxu2 %vm272_vm1, %v1824_v21  ;;  %1454 = vmatmul.msk.bf16.gmra.mxu3 %vm272_vm1, %v1824_v21 }
  0xaf   : > { %v456_v15 = vadd.f32 %v440_v12, %v352_v11 }
  0xb0   : > { %v1954_v16 = vadd.f32 %v615_v14, %v543_v13 }
  0xb1   : > { %v491_v17 = vpop.f32.mrf.mxu2  ;;  %v579_v18 = vpop.f32.mrf.mxu3 }
  0xb2   : > { %v492_v19 = vadd.f32 %v1929_v48, %v491_v17  ;;  %v580_v20 = vadd.f32 %v1934_v49, %v579_v18  ;;  %v317_v22 = vpop.f32.mrf.mxu0  ;;  %v405_v23 = vpop.f32.mrf.mxu1 }
  0xb3   : > { %v318_v25 = vadd.f32 %v1909_v40, %v317_v22  ;;  %v406_v26 = vadd.f32 %v1914_v41, %v405_v23 }
  0xb4   : > { %v528_v28 = vmul.f32 %v492_v19, %v492_v19  ;;  %v616_v29 = vmul.f32 %v580_v20, %v580_v20 }
  0xb5   : > { %v353_v31 = vmul.f32 %v318_v25, %v318_v25  ;;  %v441_v32 = vmul.f32 %v406_v26, %v406_v26 }
  0xb6   : > { %v544_v21 = vadd.f32 %v528_v28, %v456_v15 }
  0xb7   : > { %v457_v34 = vadd.f32 %v441_v32, %v353_v31 }
  0xb8   : > { %v1960_v35 = vadd.f32 %v616_v29, %v544_v21 }
  0xb9   : > { %v493_v37 = vpop.f32.mrf.mxu2  ;;  %v581_v38 = vpop.f32.mrf.mxu3 }
  0xba   : > { %v494_v42 = vadd.f32 %v1929_v48, %v493_v37  ;;  %v582_v43 = vadd.f32 %v1934_v49, %v581_v38  ;;  %v320_v44 = vpop.f32.mrf.mxu0  ;;  %v408_v45 = vpop.f32.mrf.mxu1 }
  0xbb   : > { %v321_v46 = vadd.f32 %v1909_v40, %v320_v44  ;;  %v409_v47 = vadd.f32 %v1914_v41, %v408_v45 }
  0xbc   : > { %v529_v50 = vmul.f32 %v494_v42, %v494_v42  ;;  %v617_v54 = vmul.f32 %v582_v43, %v582_v43 }
  0xbd   : > { %v354_v51 = vmul.f32 %v321_v46, %v321_v46  ;;  %v442_v52 = vmul.f32 %v409_v47, %v409_v47  ;;  %1428 = vmatmul.msk.bf16.gmra.mxu0 %vm272_vm1, %v1836_v24  ;;  %1437 = vmatmul.msk.bf16.gmra.mxu1 %vm272_vm1, %v1836_v24 }
  0xbe   : > { %v545_v53 = vadd.f32 %v529_v50, %v457_v34  ;;  %1446 = vmatmul.msk.bf16.gmra.mxu2 %vm272_vm1, %v1836_v24  ;;  %1455 = vmatmul.msk.bf16.gmra.mxu3 %vm272_vm1, %v1836_v24 }
  0xbf   : > { %v458_v55 = vadd.f32 %v442_v52, %v354_v51 }
  0xc0   : > { %v1974_v56 = vadd.f32 %v617_v54, %v545_v53 }
  0xc1   : > { %v496_v57 = vpop.f32.mrf.mxu2  ;;  %v584_v58 = vpop.f32.mrf.mxu3 }
  0xc2   : > { %v497_v59 = vadd.f32 %v1929_v48, %v496_v57  ;;  %v585_v60 = vadd.f32 %v1934_v49, %v584_v58  ;;  %v322_v61 = vpop.f32.mrf.mxu0  ;;  %v410_v62 = vpop.f32.mrf.mxu1 }
  0xc3   : > { %v323_v63 = vadd.f32 %v1909_v40, %v322_v61  ;;  %v411_v0 = vadd.f32 %v1914_v41, %v410_v62 }
  0xc4   : > { %v530_v2 = vmul.f32 %v497_v59, %v497_v59  ;;  %v618_v3 = vmul.f32 %v585_v60, %v585_v60 }
  0xc5   : > { %v355_v4 = vmul.f32 %v323_v63, %v323_v63  ;;  %v443_v24 = vmul.f32 %v411_v0, %v411_v0 }
  0xc6   : > { %v546_v5 = vadd.f32 %v530_v2, %v458_v55 }
  0xc7   : > { %v459_v6 = vadd.f32 %v443_v24, %v355_v4 }
  0xc8   : > { %v1980_v7 = vadd.f32 %v618_v3, %v546_v5 }
  0xc9   : > { %v498_v8 = vpop.f32.mrf.mxu2  ;;  %v586_v9 = vpop.f32.mrf.mxu3 }
  0xca   : > { %v499_v10 = vadd.f32 %v1929_v48, %v498_v8  ;;  %v587_v11 = vadd.f32 %v1934_v49, %v586_v9  ;;  %v325_v12 = vpop.f32.mrf.mxu0  ;;  %v413_v13 = vpop.f32.mrf.mxu1 }
  0xcb   : > { %v326_v14 = vadd.f32 %v1909_v40, %v325_v12  ;;  %v414_v15 = vadd.f32 %v1914_v41, %v413_v13 }
  0xcc   : > { %v531_v17 = vmul.f32 %v499_v10, %v499_v10  ;;  %v619_v22 = vmul.f32 %v587_v11, %v587_v11 }
  0xcd   : > { %v356_v18 = vmul.f32 %v326_v14, %v326_v14  ;;  %v444_v19 = vmul.f32 %v414_v15, %v414_v15  ;;  %1429 = vmatmul.msk.bf16.gmra.mxu0 %vm272_vm1, %v1848_v27  ;;  %1438 = vmatmul.msk.bf16.gmra.mxu1 %vm272_vm1, %v1848_v27 }
  0xce   : > { %v547_v20 = vadd.f32 %v531_v17, %v459_v6  ;;  %1447 = vmatmul.msk.bf16.gmra.mxu2 %vm272_vm1, %v1848_v27  ;;  %1456 = vmatmul.msk.bf16.gmra.mxu3 %vm272_vm1, %v1848_v27 }
  0xcf   : > { %v460_v23 = vadd.f32 %v444_v19, %v356_v18 }
  0xd0   : > { %v1995_v25 = vadd.f32 %v619_v22, %v547_v20 }
  0xd1   : > { %v501_v26 = vpop.f32.mrf.mxu2  ;;  %v589_v28 = vpop.f32.mrf.mxu3 }
  0xd2   : > { %v502_v29 = vadd.f32 %v1929_v48, %v501_v26  ;;  %v590_v31 = vadd.f32 %v1934_v49, %v589_v28  ;;  %v327_v32 = vpop.f32.mrf.mxu0  ;;  %v415_v21 = vpop.f32.mrf.mxu1 }
  0xd3   : > { %v328_v34 = vadd.f32 %v1909_v40, %v327_v32  ;;  %v416_v37 = vadd.f32 %v1914_v41, %v415_v21 }
  0xd4   : > { %v532_v38 = vmul.f32 %v502_v29, %v502_v29  ;;  %v620_v42 = vmul.f32 %v590_v31, %v590_v31 }
  0xd5   : > { %v357_v43 = vmul.f32 %v328_v34, %v328_v34  ;;  %v445_v44 = vmul.f32 %v416_v37, %v416_v37 }
  0xd6   : > { %v548_v27 = vadd.f32 %v532_v38, %v460_v23 }
  0xd7   : > { %v461_v45 = vadd.f32 %v445_v44, %v357_v43 }
  0xd8   : > { %v2001_v46 = vadd.f32 %v620_v42, %v548_v27 }
  0xd9   : > { %v503_v47 = vpop.f32.mrf.mxu2  ;;  %v591_v50 = vpop.f32.mrf.mxu3 }
  0xda   : > { %v504_v51 = vadd.f32 %v1929_v48, %v503_v47  ;;  %v592_v52 = vadd.f32 %v1934_v49, %v591_v50  ;;  %v330_v53 = vpop.f32.mrf.mxu0  ;;  %v418_v54 = vpop.f32.mrf.mxu1 }
  0xdb   : > { %v331_v55 = vadd.f32 %v1909_v40, %v330_v53  ;;  %v419_v57 = vadd.f32 %v1914_v41, %v418_v54 }
  0xdc   : > { %v533_v58 = vmul.f32 %v504_v51, %v504_v51  ;;  %v621_v62 = vmul.f32 %v592_v52, %v592_v52 }
  0xdd   : > { %v358_v59 = vmul.f32 %v331_v55, %v331_v55  ;;  %v446_v60 = vmul.f32 %v419_v57, %v419_v57  ;;  %1430 = vmatmul.msk.bf16.gmra.mxu0 %vm272_vm1, %v1860_v30  ;;  %1439 = vmatmul.msk.bf16.gmra.mxu1 %vm272_vm1, %v1860_v30 }
  0xde   : > { %v549_v61 = vadd.f32 %v533_v58, %v461_v45  ;;  %1448 = vmatmul.msk.bf16.gmra.mxu2 %vm272_vm1, %v1860_v30  ;;  %1457 = vmatmul.msk.bf16.gmra.mxu3 %vm272_vm1, %v1860_v30 }
  0xdf   : > { %v462_v63 = vadd.f32 %v446_v60, %v358_v59 }
  0xe0   : > { %v2015_v0 = vadd.f32 %v621_v62, %v549_v61 }
  0xe1   : > { %v506_v2 = vpop.f32.mrf.mxu2  ;;  %v594_v3 = vpop.f32.mrf.mxu3 }
  0xe2   : > { %v507_v4 = vadd.f32 %v1929_v48, %v506_v2  ;;  %v595_v24 = vadd.f32 %v1934_v49, %v594_v3  ;;  %v332_v5 = vpop.f32.mrf.mxu0  ;;  %v420_v6 = vpop.f32.mrf.mxu1 }
  0xe3   : > { %v333_v8 = vadd.f32 %v1909_v40, %v332_v5  ;;  %v421_v9 = vadd.f32 %v1914_v41, %v420_v6 }
  0xe4   : > { %v534_v10 = vmul.f32 %v507_v4, %v507_v4  ;;  %v622_v11 = vmul.f32 %v595_v24, %v595_v24 }
  0xe5   : > { %v359_v12 = vmul.f32 %v333_v8, %v333_v8  ;;  %v447_v13 = vmul.f32 %v421_v9, %v421_v9 }
  0xe6   : > { %v550_v30 = vadd.f32 %v534_v10, %v462_v63 }
  0xe7   : > { %v463_v14 = vadd.f32 %v447_v13, %v359_v12 }
  0xe8   : > { %v2021_v15 = vadd.f32 %v622_v11, %v550_v30 }
  0xe9   : > { %v508_v17 = vpop.f32.mrf.mxu2  ;;  %v596_v18 = vpop.f32.mrf.mxu3 }
  0xea   : > { %v509_v19 = vadd.f32 %v1929_v48, %v508_v17  ;;  %v597_v20 = vadd.f32 %v1934_v49, %v596_v18  ;;  %v335_v22 = vpop.f32.mrf.mxu0  ;;  %v423_v23 = vpop.f32.mrf.mxu1 }
  0xeb   : > { %v336_v26 = vadd.f32 %v1909_v40, %v335_v22  ;;  %v424_v28 = vadd.f32 %v1914_v41, %v423_v23 }
  0xec   : > { %v535_v29 = vmul.f32 %v509_v19, %v509_v19  ;;  %v623_v34 = vmul.f32 %v597_v20, %v597_v20 }
  0xed   : > { %v360_v31 = vmul.f32 %v336_v26, %v336_v26  ;;  %v448_v32 = vmul.f32 %v424_v28, %v424_v28  ;;  %1431 = vmatmul.msk.bf16.gmra.mxu0 %vm272_vm1, %v1872_v33  ;;  %1440 = vmatmul.msk.bf16.gmra.mxu1 %vm272_vm1, %v1872_v33 }
  0xee   : > { %v551_v21 = vadd.f32 %v535_v29, %v463_v14  ;;  %1449 = vmatmul.msk.bf16.gmra.mxu2 %vm272_vm1, %v1872_v33  ;;  %1458 = vmatmul.msk.bf16.gmra.mxu3 %vm272_vm1, %v1872_v33 }
  0xef   : > { %v464_v37 = vadd.f32 %v448_v32, %v360_v31 }
  0xf0   : > { %v2035_v38 = vadd.f32 %v623_v34, %v551_v21 }
  0xf1   : > { %v511_v42 = vpop.f32.mrf.mxu2  ;;  %v599_v43 = vpop.f32.mrf.mxu3 }
  0xf2   : > { %v512_v44 = vadd.f32 %v1929_v48, %v511_v42  ;;  %v600_v27 = vadd.f32 %v1934_v49, %v599_v43  ;;  %v337_v45 = vpop.f32.mrf.mxu0  ;;  %v425_v47 = vpop.f32.mrf.mxu1 }
  0xf3   : > { %v338_v50 = vadd.f32 %v1909_v40, %v337_v45  ;;  %v426_v51 = vadd.f32 %v1914_v41, %v425_v47 }
  0xf4   : > { %v536_v52 = vmul.f32 %v512_v44, %v512_v44  ;;  %v624_v53 = vmul.f32 %v600_v27, %v600_v27 }
  0xf5   : > { %v361_v54 = vmul.f32 %v338_v50, %v338_v50  ;;  %v449_v55 = vmul.f32 %v426_v51, %v426_v51 }
  0xf6   : > { %v552_v33 = vadd.f32 %v536_v52, %v464_v37 }
  0xf7   : > { %v465_v57 = vadd.f32 %v449_v55, %v361_v54 }
  0xf8   : > { %v2041_v58 = vadd.f32 %v624_v53, %v552_v33 }
  0xf9   : > { %v513_v59 = vpop.f32.mrf.mxu2  ;;  %v601_v60 = vpop.f32.mrf.mxu3 }
  0xfa   : > { %v514_v61 = vadd.f32 %v1929_v48, %v513_v59  ;;  %v602_v62 = vadd.f32 %v1934_v49, %v601_v60  ;;  %v340_v63 = vpop.f32.mrf.mxu0  ;;  %v428_v2 = vpop.f32.mrf.mxu1 }
  0xfb   : > { %v341_v3 = vadd.f32 %v1909_v40, %v340_v63  ;;  %v429_v4 = vadd.f32 %v1914_v41, %v428_v2 }
  0xfc   : > { %v537_v24 = vmul.f32 %v514_v61, %v514_v61  ;;  %v625_v9 = vmul.f32 %v602_v62, %v602_v62 }
  0xfd   : > { %v362_v5 = vmul.f32 %v341_v3, %v341_v3  ;;  %v450_v6 = vmul.f32 %v429_v4, %v429_v4  ;;  %1432 = vmatmul.msk.bf16.gmra.mxu0 %vm272_vm1, %v1884_v36  ;;  %1441 = vmatmul.msk.bf16.gmra.mxu1 %vm272_vm1, %v1884_v36 }
  0xfe   : > { %v553_v8 = vadd.f32 %v537_v24, %v465_v57  ;;  %1450 = vmatmul.msk.bf16.gmra.mxu2 %vm272_vm1, %v1884_v36  ;;  %1459 = vmatmul.msk.bf16.gmra.mxu3 %vm272_vm1, %v1884_v36 }
  0xff   : > { %v466_v10 = vadd.f32 %v450_v6, %v362_v5  ;;  %v2084_v6 = vld [vmem:[%s2405_s2 + $0x4] ss:$0 sm:$0xff] }
 0x100   : > { %v2055_v11 = vadd.f32 %v625_v9, %v553_v8  ;;  %v2091_v9 = vld [vmem:[%s2405_s2 + $0x5] ss:$0 sm:$0xff] }
 0x101   : > { %v516_v12 = vpop.f32.mrf.mxu2  ;;  %v604_v13 = vpop.f32.mrf.mxu3 }
 0x102   : > { %v517_v30 = vadd.f32 %v1929_v48, %v516_v12  ;;  %v605_v14 = vadd.f32 %v1934_v49, %v604_v13  ;;  %v342_v17 = vpop.f32.mrf.mxu0  ;;  %v430_v18 = vpop.f32.mrf.mxu1 }
 0x103   : > { %v343_v19 = vadd.f32 %v1909_v40, %v342_v17  ;;  %v431_v20 = vadd.f32 %v1914_v41, %v430_v18 }
 0x104   : > { %v538_v22 = vmul.f32 %v517_v30, %v517_v30  ;;  %v626_v23 = vmul.f32 %v605_v14, %v605_v14 }
 0x105   : > { %v363_v26 = vmul.f32 %v343_v19, %v343_v19  ;;  %v451_v28 = vmul.f32 %v431_v20, %v431_v20 }
 0x106   : > { %v554_v36 = vadd.f32 %v538_v22, %v466_v10 }
 0x107   : > { %v467_v29 = vadd.f32 %v451_v28, %v363_v26 }
 0x108   : > { %v2061_v31 = vadd.f32 %v626_v23, %v554_v36  ;;  %v2100_v23 = vld [vmem:[%s2405_s2 + $0x6] ss:$0 sm:$0xff] }
 0x109   : > { %v518_v32 = vpop.f32.mrf.mxu2  ;;  %v606_v21 = vpop.f32.mrf.mxu3 }
 0x10a   : > { %v519_v34 = vadd.f32 %v1929_v48, %v518_v32  ;;  %v607_v37 = vadd.f32 %v1934_v49, %v606_v21  ;;  %v345_v42 = vpop.f32.mrf.mxu0  ;;  %v433_v43 = vpop.f32.mrf.mxu1 }
 0x10b   : > { %v346_v44 = vadd.f32 %v1909_v40, %v345_v42  ;;  %v434_v27 = vadd.f32 %v1914_v41, %v433_v43 }
 0x10c   : > { %v539_v45 = vmul.f32 %v519_v34, %v519_v34  ;;  %v627_v52 = vmul.f32 %v607_v37, %v607_v37 }
 0x10d   : > { %v364_v47 = vmul.f32 %v346_v44, %v346_v44  ;;  %v452_v50 = vmul.f32 %v434_v27, %v434_v27  ;;  %1433 = vmatmul.msk.bf16.gmra.mxu0 %vm272_vm1, %v1896_v39  ;;  %1442 = vmatmul.msk.bf16.gmra.mxu1 %vm272_vm1, %v1896_v39 }
 0x10e   : > { %v555_v51 = vadd.f32 %v539_v45, %v467_v29  ;;  %1451 = vmatmul.msk.bf16.gmra.mxu2 %vm272_vm1, %v1896_v39  ;;  %1460 = vmatmul.msk.bf16.gmra.mxu3 %vm272_vm1, %v1896_v39 }
 0x10f   : > { %v468_v53 = vadd.f32 %v452_v50, %v364_v47 }
 0x110   : > { %v2075_v54 = vadd.f32 %v627_v52, %v555_v51 }
 0x111   : > { %v521_v55 = vpop.f32.mrf.mxu2  ;;  %v609_v33 = vpop.f32.mrf.mxu3 }
 0x112   : > { %v522_v57 = vadd.f32 %v1929_v48, %v521_v55  ;;  %v610_v59 = vadd.f32 %v1934_v49, %v609_v33  ;;  %v347_v60 = vpop.f32.mrf.mxu0  ;;  %v435_v61 = vpop.f32.mrf.mxu1 }
 0x113   : > { %v348_v62 = vadd.f32 %v1909_v40, %v347_v60  ;;  %v436_v63 = vadd.f32 %v1914_v41, %v435_v61 }
 0x114   : > { %v540_v2 = vmul.f32 %v522_v57, %v522_v57  ;;  %v628_v3 = vmul.f32 %v610_v59, %v610_v59 }
 0x115   : > { %v365_v4 = vmul.f32 %v348_v62, %v348_v62  ;;  %v453_v24 = vmul.f32 %v436_v63, %v436_v63 }
 0x116   : > { %v556_v39 = vadd.f32 %v540_v2, %v468_v53 }
 0x117   : > { %v469_v5 = vadd.f32 %v453_v24, %v365_v4 }
 0x118   : > { %v2086_v8 = vadd.f32 %v628_v3, %v556_v39 }
 0x119   : > { %v523_v40 = vpop.f32.mrf.mxu2  ;;  %v611_v41 = vpop.f32.mrf.mxu3 }
 0x11a   : > { %v524_v10 = vadd.f32 %v1929_v48, %v523_v40  ;;  %v612_v12 = vadd.f32 %v1934_v49, %v611_v41  ;;  %v662_v13 = vpop.f32.mrf.mxu0  ;;  %v750_v30 = vpop.f32.mrf.mxu1  ;;  %v2105_v48 = vld [vmem:[%s2405_s2 + $0x7] ss:$0 sm:$0xff] }
 0x11b   : > { %v663_v14 = vadd.f32 %v2084_v6, %v662_v13  ;;  %v751_v18 = vadd.f32 %v2091_v9, %v750_v30 }
 0x11c   : > { %v541_v17 = vmul.f32 %v524_v10, %v524_v10  ;;  %v629_v22 = vmul.f32 %v612_v12, %v612_v12 }
 0x11d   : > { %v702_v19 = vmul.f32 %v663_v14, %v663_v14  ;;  %v790_v28 = vmul.f32 %v751_v18, %v751_v18 }
 0x11e   : > { %v557_v20 = vadd.f32 %v541_v17, %v469_v5 }
 0x11f   : > { %v718_v26 = vadd.f32 %v702_v19, %v1940_v1 }
 0x120   : > { %v2107_v49 = vadd.f32 %v629_v22, %v557_v20 }
 0x121   : > { %v838_v36 = vpop.f32.mrf.mxu2  ;;  %v926_v29 = vpop.f32.mrf.mxu3  ;;  %v806_v43 = vadd.f32 %v790_v28, %v718_v26 }
 0x122   : > { %v839_v32 = vadd.f32 %v2100_v23, %v838_v36  ;;  %v927_v21 = vadd.f32 %v2105_v48, %v926_v29  ;;  %v664_v34 = vpop.f32.mrf.mxu0  ;;  %v752_v37 = vpop.f32.mrf.mxu1 }
 0x123   : > { %v665_v42 = vadd.f32 %v2084_v6, %v664_v34  ;;  %v753_v50 = vadd.f32 %v2091_v9, %v752_v37 }
 0x124   : > { %v878_v44 = vmul.f32 %v839_v32, %v839_v32  ;;  %v966_v27 = vmul.f32 %v927_v21, %v927_v21 }
 0x125   : > { %v703_v45 = vmul.f32 %v665_v42, %v665_v42  ;;  %v791_v57 = vmul.f32 %v753_v50, %v753_v50 }
 0x126   : > { %v894_v47 = vadd.f32 %v878_v44, %v806_v43 }
 0x127   : > { %v719_v1 = vadd.f32 %v703_v45, %v1954_v16 }
 0x128   : > { %v2114_v51 = vadd.f32 %v966_v27, %v894_v47 }
 0x129   : > { %v840_v52 = vpop.f32.mrf.mxu2  ;;  %v928_v53 = vpop.f32.mrf.mxu3  ;;  %v807_v63 = vadd.f32 %v791_v57, %v719_v1 }
 0x12a   : > { %1535 = vrsqrt.f32 %v2114_v51  ;;  %v667_v55 = vpop.f32.mrf.mxu0  ;;  %v755_v33 = vpop.f32.mrf.mxu1  ;;  %v841_v59 = vadd.f32 %v2100_v23, %v840_v52  ;;  %v929_v60 = vadd.f32 %v2105_v48, %v928_v53  ;;  %vm1005_vm2 = vcmp.eq.f32.partialorder %v2114_v51, inf }
 0x12b   : > { %v668_v61 = vadd.f32 %v2084_v6, %v667_v55  ;;  %v756_v62 = vadd.f32 %v2091_v9, %v755_v33  ;;  %v1008_v1 = vand.u32 2147483648, %v2114_v51  ;;  %vm1007_vm3 = vcmp.eq.f32.partialorder %v2114_v51, 0.0 }
 0x12c   : > { %v879_v2 = vmul.f32 %v841_v59, %v841_v59  ;;  %v967_v16 = vmul.f32 %v929_v60, %v929_v60 }
 0x12d   : > { %v704_v3 = vmul.f32 %v668_v61, %v668_v61  ;;  %v792_v5 = vmul.f32 %v756_v62, %v756_v62 }
 0x12e   : > { %v895_v4 = vadd.f32 %v879_v2, %v807_v63 }
 0x12f   : > { %v720_v39 = vadd.f32 %v704_v3, %v1960_v35 }
 0x130   : > { %v1536_v24 = vpop.eup %1535  ;;  %v2124_v41 = vadd.f32 %v967_v16, %v895_v4 }
 0x131   : > { %v999_v40 = vmul.f32 %v1536_v24, %v2114_v51  ;;  %v843_v10 = vpop.f32.mrf.mxu2  ;;  %v931_v12 = vpop.f32.mrf.mxu3  ;;  %v808_v19 = vadd.f32 %v792_v5, %v720_v39 }
 0x132   : > { %v844_v13 = vadd.f32 %v2100_v23, %v843_v10  ;;  %v932_v30 = vadd.f32 %v2105_v48, %v931_v12  ;;  %v669_v14 = vpop.f32.mrf.mxu0  ;;  %v757_v17 = vpop.f32.mrf.mxu1  ;;  %1537 = vrsqrt.f32 %v2124_v41  ;;  %vm1017_vm4 = vcmp.eq.f32.partialorder %v2124_v41, inf }
 0x133   : > { %v1000_v18 = vmul.f32 %v1536_v24, %v999_v40  ;;  %v670_v35 = vadd.f32 %v2084_v6, %v669_v14  ;;  %v758_v32 = vadd.f32 %v2091_v9, %v757_v17  ;;  %vm1019_vm5 = vcmp.eq.f32.partialorder %v2124_v41, 0.0 }
 0x134   : > { %v880_v20 = vmul.f32 %v844_v13, %v844_v13  ;;  %v968_v22 = vmul.f32 %v932_v30, %v932_v30 }
 0x135   : > { %v1001_v26 = vmul.f32 0.5, %v1000_v18  ;;  %v705_v36 = vmul.f32 %v670_v35, %v670_v35  ;;  %v793_v52 = vmul.f32 %v758_v32, %v758_v32 }
 0x136   : > { %v896_v28 = vadd.f32 %v880_v20, %v808_v19 }
 0x137   : > { %v1002_v29 = vsub.f32 1.5, %v1001_v26  ;;  %v721_v42 = vadd.f32 %v705_v36, %v1974_v56 }
 0x138   : > { %v2131_v21 = vadd.f32 %v968_v22, %v896_v28  ;;  %v1538_v34 = vpop.eup %1537  ;;  %v1020_v28 = vand.u32 2147483648, %v2124_v41 }
 0x139   : > { %v1003_v37 = vmul.f32 %v1536_v24, %v1002_v29  ;;  %v845_v43 = vpop.f32.mrf.mxu2  ;;  %v933_v44 = vpop.f32.mrf.mxu3  ;;  %v1011_v27 = vmul.f32 %v1538_v34, %v2124_v41  ;;  %v809_v60 = vadd.f32 %v793_v52, %v721_v42 }
 0x13a   : > { %1539 = vrsqrt.f32 %v2131_v21  ;;  %v672_v45 = vpop.f32.mrf.mxu0  ;;  %v760_v47 = vpop.f32.mrf.mxu1  ;;  %v846_v53 = vadd.f32 %v2100_v23, %v845_v43  ;;  %v934_v56 = vadd.f32 %v2105_v48, %v933_v44  ;;  %vm1029_vm6 = vcmp.eq.f32.partialorder %v2131_v21, inf }
 0x13b   : > { %v1004_v50 = vmul.f32 %v1003_v37, %v2114_v51  ;;  %v1012_v55 = vmul.f32 %v1538_v34, %v1011_v27  ;;  %v673_v33 = vadd.f32 %v2084_v6, %v672_v45  ;;  %v761_v57 = vadd.f32 %v2091_v9, %v760_v47 }
 0x13c   : > { %v881_v61 = vmul.f32 %v846_v53, %v846_v53  ;;  %v969_v16 = vmul.f32 %v934_v56, %v934_v56  ;;  %vm1031_vm7 = vcmp.eq.f32.partialorder %v2131_v21, 0.0 }
 0x13d   : > { %v1006_v59 = vsel %vm1005_vm2, %v2114_v51, %v1004_v50  ;;  %v1013_v63 = vmul.f32 0.5, %v1012_v55  ;;  %v706_v2 = vmul.f32 %v673_v33, %v673_v33  ;;  %v794_v40 = vmul.f32 %v761_v57, %v761_v57 }
 0x13e   : > { %v1009_v62 = vsel %vm1007_vm3, %v1008_v1, %v1006_v59  ;;  %v897_v4 = vadd.f32 %v881_v61, %v809_v60  ;;  %v1032_v60 = vand.u32 2147483648, %v2131_v21 }
 0x13f   : > { %v1190_v3 = vsub.f32 0.0, %v1009_v62  ;;  %v1014_v39 = vsub.f32 1.5, %v1013_v63  ;;  %v722_v5 = vadd.f32 %v706_v2, %v1980_v7 }
 0x140   : > { %v1540_v24 = vpop.eup %1539  ;;  %v2147_v13 = vadd.f32 %v969_v16, %v897_v4 }
 0x141   : > { %v1206_v10 = vmul.f32 1.442695, %v1190_v3  ;;  %v1023_v12 = vmul.f32 %v1540_v24, %v2131_v21  ;;  %v848_v51 = vpop.f32.mrf.mxu2  ;;  %v936_v30 = vpop.f32.mrf.mxu3  ;;  %v1015_v14 = vmul.f32 %v1538_v34, %v1014_v39  ;;  %v810_v35 = vadd.f32 %v794_v40, %v722_v5 }
 0x142   : > { %v849_v17 = vadd.f32 %v2100_v23, %v848_v51  ;;  %v937_v18 = vadd.f32 %v2105_v48, %v936_v30  ;;  %v674_v19 = vpop.f32.mrf.mxu0  ;;  %v762_v20 = vpop.f32.mrf.mxu1  ;;  %vm1041_vm8 = vcmp.eq.f32.partialorder %v2147_v13, inf  ;;  %vm1043_vm9 = vcmp.eq.f32.partialorder %v2147_v13, 0.0 }
 0x143   : > { %1541 = vpow2.f32 %v1206_v10  ;;  %v1024_v22 = vmul.f32 %v1540_v24, %v1023_v12  ;;  %v1016_v7 = vmul.f32 %v1015_v14, %v2124_v41  ;;  %v675_v32 = vadd.f32 %v2084_v6, %v674_v19 }
 0x144   : > { %1543 = vrsqrt.f32 %v2147_v13  ;;  %v882_v26 = vmul.f32 %v849_v17, %v849_v17  ;;  %v970_v29 = vmul.f32 %v937_v18, %v937_v18  ;;  %v763_v27 = vadd.f32 %v2091_v9, %v762_v20 }
 0x145   : > { %v1025_v36 = vmul.f32 0.5, %v1024_v22  ;;  %v1018_v34 = vsel %vm1017_vm4, %v2124_v41, %v1016_v7  ;;  %v707_v44 = vmul.f32 %v675_v32, %v675_v32 }
 0x146   : > { %v898_v37 = vadd.f32 %v882_v26, %v810_v35  ;;  %v1021_v42 = vsel %vm1019_vm5, %v1020_v28, %v1018_v34  ;;  %v795_v62 = vmul.f32 %v763_v27, %v763_v27 }
 0x147   : > { %v1026_v43 = vsub.f32 1.5, %v1025_v36  ;;  %v1191_v45 = vsub.f32 0.0, %v1021_v42  ;;  %v723_v41 = vadd.f32 %v707_v44, %v1995_v25 }
 0x148   : > { %v2161_v47 = vadd.f32 %v970_v29, %v898_v37 }
 0x149   : > { %v1542_v50 = vpop.eup %1541  ;;  %v1027_v1 = vmul.f32 %v1540_v24, %v1026_v43  ;;  %v850_v52 = vpop.f32.mrf.mxu2  ;;  %v1208_v56 = vmul.f32 1.442695, %v1191_v45  ;;  %v811_v39 = vadd.f32 %v795_v62, %v723_v41 }
 0x14a   : > { %v938_v53 = vpop.f32.mrf.mxu3  ;;  %v1544_v55 = vpop.eup %1543  ;;  %1238 = vst [vmem:[%s2163_s7] sm:$0xff] %v1542_v50  ;;  %1545 = vrsqrt.f32 %v2161_v47  ;;  %v851_v63 = vadd.f32 %v2100_v23, %v850_v52  ;;  %v1044_v50 = vand.u32 2147483648, %v2147_v13  ;;  %vm1053_vm10 = vcmp.eq.f32.partialorder %v2161_v47, inf }
 0x14b   : > { %v677_v33 = vpop.f32.mrf.mxu0  ;;  %v765_v57 = vpop.f32.mrf.mxu1  ;;  %v1028_v59 = vmul.f32 %v1027_v1, %v2131_v21  ;;  %v1035_v61 = vmul.f32 %v1544_v55, %v2147_v13  ;;  %1547 = vpow2.f32 %v1208_v56  ;;  %v939_v2 = vadd.f32 %v2105_v48, %v938_v53 }
 0x14c   : > { %v678_v3 = vadd.f32 %v2084_v6, %v677_v33  ;;  %v766_v16 = vadd.f32 %v2091_v9, %v765_v57  ;;  %v883_v5 = vmul.f32 %v851_v63, %v851_v63  ;;  %vm1055_vm11 = vcmp.eq.f32.partialorder %v2161_v47, 0.0 }
 0x14d   : > { %v1030_v4 = vsel %vm1029_vm6, %v2131_v21, %v1028_v59  ;;  %v1036_v25 = vmul.f32 %v1544_v55, %v1035_v61  ;;  %v971_v14 = vmul.f32 %v939_v2, %v939_v2 }
 0x14e   : > { %v1033_v24 = vsel %vm1031_vm7, %v1032_v60, %v1030_v4  ;;  %v708_v40 = vmul.f32 %v678_v3, %v678_v3  ;;  %v899_v30 = vadd.f32 %v883_v5, %v811_v39  ;;  %v796_v18 = vmul.f32 %v766_v16, %v766_v16 }
 0x14f   : > { %v1192_v10 = vsub.f32 0.0, %v1033_v24  ;;  %v1037_v12 = vmul.f32 0.5, %v1036_v25  ;;  %v1056_v5 = vand.u32 2147483648, %v2161_v47 }
 0x150   : > { %v1546_v51 = vpop.eup %1545  ;;  %v724_v17 = vadd.f32 %v708_v40, %v2001_v46  ;;  %v2180_v26 = vadd.f32 %v971_v14, %v899_v30 }
 0x151   : > { %v1210_v19 = vmul.f32 1.442695, %v1192_v10  ;;  %v1038_v20 = vsub.f32 1.5, %v1037_v12  ;;  %v1047_v21 = vmul.f32 %v1546_v51, %v2161_v47  ;;  %v853_v22 = vpop.f32.mrf.mxu2  ;;  %v1548_v35 = vpop.eup %1547 }
 0x152   : > { %v941_v7 = vpop.f32.mrf.mxu3  ;;  %v854_v28 = vadd.f32 %v2100_v23, %v853_v22  ;;  %1239 = vst [vmem:[%s2163_s7 + $0x8] sm:$0xff] %v1548_v35  ;;  %v812_v42 = vadd.f32 %v796_v18, %v724_v17  ;;  %vm1065_vm12 = vcmp.eq.f32.partialorder %v2180_v26, inf  ;;  %vm1067_vm13 = vcmp.eq.f32.partialorder %v2180_v26, 0.0 }
 0x153   : > { %v942_v36 = vadd.f32 %v2105_v48, %v941_v7  ;;  %v679_v29 = vpop.f32.mrf.mxu0  ;;  %v767_v32 = vpop.f32.mrf.mxu1  ;;  %1549 = vpow2.f32 %v1210_v19  ;;  %v1039_v34 = vmul.f32 %v1544_v55, %v1038_v20  ;;  %v1048_v46 = vmul.f32 %v1546_v51, %v1047_v21 }
 0x154   : > { %v680_v37 = vadd.f32 %v2084_v6, %v679_v29  ;;  %1551 = vrsqrt.f32 %v2180_v26  ;;  %v884_v27 = vmul.f32 %v854_v28, %v854_v28  ;;  %v768_v52 = vadd.f32 %v2091_v9, %v767_v32 }
 0x155   : > { %v1040_v43 = vmul.f32 %v1039_v34, %v2147_v13  ;;  %v1049_v44 = vmul.f32 0.5, %v1048_v46  ;;  %v972_v45 = vmul.f32 %v942_v36, %v942_v36 }
 0x156   : > { %v709_v1 = vmul.f32 %v680_v37, %v680_v37  ;;  %v900_v56 = vadd.f32 %v884_v27, %v812_v42  ;;  %v797_v3 = vmul.f32 %v768_v52, %v768_v52 }
 0x157   : > { %v1042_v53 = vsel %vm1041_vm8, %v2147_v13, %v1040_v43  ;;  %v1050_v55 = vsub.f32 1.5, %v1049_v44 }
 0x158   : > { %v1045_v41 = vsel %vm1043_vm9, %v1044_v50, %v1042_v53  ;;  %v725_v33 = vadd.f32 %v709_v1, %v2015_v0  ;;  %v2194_v61 = vadd.f32 %v972_v45, %v900_v56  ;;  %v1068_v53 = vand.u32 2147483648, %v2180_v26 }
 0x159   : > { %v1550_v57 = vpop.eup %1549  ;;  %v1193_v59 = vsub.f32 0.0, %v1045_v41  ;;  %v1051_v60 = vmul.f32 %v1546_v51, %v1050_v55  ;;  %v855_v62 = vpop.f32.mrf.mxu2 }
 0x15a   : > { %v943_v63 = vpop.f32.mrf.mxu3  ;;  %v1552_v2 = vpop.eup %1551  ;;  %1240 = vst [vmem:[%s2163_s7 + $0x10] sm:$0xff] %v1550_v57  ;;  %v856_v4 = vadd.f32 %v2100_v23, %v855_v62  ;;  %1553 = vrsqrt.f32 %v2194_v61  ;;  %v813_v40 = vadd.f32 %v797_v3, %v725_v33  ;;  %vm1077_vm14 = vcmp.eq.f32.partialorder %v2194_v61, inf }
 0x15b   : > { %v944_v13 = vadd.f32 %v2105_v48, %v943_v63  ;;  %v682_v25 = vpop.f32.mrf.mxu0  ;;  %v770_v16 = vpop.f32.mrf.mxu1  ;;  %v1212_v24 = vmul.f32 1.442695, %v1193_v59  ;;  %v1052_v0 = vmul.f32 %v1051_v60, %v2161_v47  ;;  %v1059_v39 = vmul.f32 %v1552_v2, %v2180_v26 }
 0x15c   : > { %v885_v10 = vmul.f32 %v856_v4, %v856_v4  ;;  %v683_v18 = vadd.f32 %v2084_v6, %v682_v25  ;;  %v771_v19 = vadd.f32 %v2091_v9, %v770_v16  ;;  %vm1079_vm15 = vcmp.eq.f32.partialorder %v2194_v61, 0.0 }
 0x15d   : > { %1555 = vpow2.f32 %v1212_v24  ;;  %v1054_v12 = vsel %vm1053_vm10, %v2161_v47, %v1052_v0  ;;  %v1060_v51 = vmul.f32 %v1552_v2, %v1059_v39  ;;  %v973_v30 = vmul.f32 %v944_v13, %v944_v13 }
 0x15e   : > { %v1057_v14 = vsel %vm1055_vm11, %v1056_v5, %v1054_v12  ;;  %v901_v17 = vadd.f32 %v885_v10, %v813_v40  ;;  %v710_v7 = vmul.f32 %v683_v18, %v683_v18  ;;  %v798_v29 = vmul.f32 %v771_v19, %v771_v19 }
 0x15f   : > { %v1194_v20 = vsub.f32 0.0, %v1057_v14  ;;  %v1061_v21 = vmul.f32 0.5, %v1060_v51 }
 0x160   : > { %v2208_v22 = vadd.f32 %v973_v30, %v901_v17  ;;  %v1554_v35 = vpop.eup %1553  ;;  %v726_v44 = vadd.f32 %v710_v7, %v2021_v15 }
 0x161   : > { %v1214_v28 = vmul.f32 1.442695, %v1194_v20  ;;  %v1062_v36 = vsub.f32 1.5, %v1061_v21  ;;  %v858_v32 = vpop.f32.mrf.mxu2  ;;  %v1071_v34 = vmul.f32 %v1554_v35, %v2194_v61 }
 0x162   : > { %v946_v47 = vpop.f32.mrf.mxu3  ;;  %1557 = vrsqrt.f32 %v2208_v22  ;;  %v859_v45 = vadd.f32 %v2100_v23, %v858_v32  ;;  %v814_v55 = vadd.f32 %v798_v29, %v726_v44  ;;  %vm1089_vm0 = vcmp.eq.f32.partialorder %v2208_v22, inf }
 0x163   : > { %v684_v46 = vpop.f32.mrf.mxu0  ;;  %v772_v37 = vpop.f32.mrf.mxu1  ;;  %1559 = vpow2.f32 %v1214_v28  ;;  %v1063_v43 = vmul.f32 %v1552_v2, %v1062_v36  ;;  %v1072_v27 = vmul.f32 %v1554_v35, %v1071_v34  ;;  %v947_v50 = vadd.f32 %v2105_v48, %v946_v47 }
 0x164   : > { %v1556_v42 = vpop.eup %1555  ;;  %v685_v1 = vadd.f32 %v2084_v6, %v684_v46  ;;  %v773_v56 = vadd.f32 %v2091_v9, %v772_v37  ;;  %v886_v33 = vmul.f32 %v859_v45, %v859_v45  ;;  %vm1091_vm1 = vcmp.eq.f32.partialorder %v2208_v22, 0.0 }
 0x165   : > { %1241 = vst [vmem:[%s2163_s7 + $0x18] sm:$0xff] %v1556_v42  ;;  %v1064_v52 = vmul.f32 %v1063_v43, %v2180_v26  ;;  %v1073_v41 = vmul.f32 0.5, %v1072_v27  ;;  %v974_v57 = vmul.f32 %v947_v50, %v947_v50 }
 0x166   : > { %v711_v15 = vmul.f32 %v685_v1, %v685_v1  ;;  %v902_v2 = vadd.f32 %v886_v33, %v814_v55  ;;  %v799_v5 = vmul.f32 %v773_v56, %v773_v56  ;;  %v1092_v56 = vand.u32 2147483648, %v2208_v22 }
 0x167   : > { %v1066_v59 = vsel %vm1065_vm12, %v2180_v26, %v1064_v52  ;;  %v1074_v63 = vsub.f32 1.5, %v1073_v41 }
 0x168   : > { %v1558_v60 = vpop.eup %1557  ;;  %v1069_v62 = vsel %vm1067_vm13, %v1068_v53, %v1066_v59  ;;  %v727_v25 = vadd.f32 %v711_v15, %v2035_v38  ;;  %v2226_v39 = vadd.f32 %v974_v57, %v902_v2  ;;  %v1080_v38 = vand.u32 2147483648, %v2194_v61 }
 0x169   : > { %v1560_v3 = vpop.eup %1559  ;;  %v1195_v4 = vsub.f32 0.0, %v1069_v62  ;;  %v1083_v13 = vmul.f32 %v1558_v60, %v2208_v22  ;;  %v860_v16 = vpop.f32.mrf.mxu2  ;;  %v1075_v0 = vmul.f32 %v1554_v35, %v1074_v63 }
 0x16a   : > { %v948_v24 = vpop.f32.mrf.mxu3  ;;  %1242 = vst [vmem:[%s2163_s7 + $0x20] sm:$0xff] %v1560_v3  ;;  %v861_v40 = vadd.f32 %v2100_v23, %v860_v16  ;;  %1561 = vrsqrt.f32 %v2226_v39  ;;  %v815_v19 = vadd.f32 %v799_v5, %v727_v25  ;;  %vm1101_vm2 = vcmp.eq.f32.partialorder %v2226_v39, inf }
 0x16b   : > { %v687_v26 = vpop.f32.mrf.mxu0  ;;  %v775_v10 = vpop.f32.mrf.mxu1  ;;  %v1216_v12 = vmul.f32 1.442695, %v1195_v4  ;;  %v1084_v51 = vmul.f32 %v1558_v60, %v1083_v13  ;;  %v949_v30 = vadd.f32 %v2105_v48, %v948_v24  ;;  %v1076_v17 = vmul.f32 %v1075_v0, %v2194_v61 }
 0x16c   : > { %v688_v14 = vadd.f32 %v2084_v6, %v687_v26  ;;  %v887_v20 = vmul.f32 %v861_v40, %v861_v40  ;;  %v776_v35 = vadd.f32 %v2091_v9, %v775_v10  ;;  %vm1103_vm3 = vcmp.eq.f32.partialorder %v2226_v39, 0.0 }
 0x16d   : > { %1563 = vpow2.f32 %v1216_v12  ;;  %v1085_v18 = vmul.f32 0.5, %v1084_v51  ;;  %v1078_v21 = vsel %vm1077_vm14, %v2194_v61, %v1076_v17  ;;  %v975_v32 = vmul.f32 %v949_v30, %v949_v30 }
 0x16e   : > { %v712_v7 = vmul.f32 %v688_v14, %v688_v14  ;;  %v1081_v28 = vsel %vm1079_vm15, %v1080_v38, %v1078_v21  ;;  %v903_v29 = vadd.f32 %v887_v20, %v815_v19  ;;  %v800_v46 = vmul.f32 %v776_v35, %v776_v35 }
 0x16f   : > { %v1086_v36 = vsub.f32 1.5, %v1085_v18  ;;  %v1196_v47 = vsub.f32 0.0, %v1081_v28  ;;  %v1104_v21 = vand.u32 2147483648, %v2226_v39 }
 0x170   : > { %v728_v34 = vadd.f32 %v712_v7, %v2041_v58  ;;  %v2239_v42 = vadd.f32 %v975_v32, %v903_v29  ;;  %v1562_v27 = vpop.eup %1561 }
 0x171   : > { %v1087_v37 = vmul.f32 %v1558_v60, %v1086_v36  ;;  %v863_v43 = vpop.f32.mrf.mxu2  ;;  %v1218_v45 = vmul.f32 1.442695, %v1196_v47  ;;  %v1095_v55 = vmul.f32 %v1562_v27, %v2226_v39 }
 0x172   : > { %v951_v44 = vpop.f32.mrf.mxu3  ;;  %v864_v61 = vadd.f32 %v2100_v23, %v863_v43  ;;  %1565 = vrsqrt.f32 %v2239_v42  ;;  %v816_v41 = vadd.f32 %v800_v46, %v728_v34  ;;  %vm1113_vm4 = vcmp.eq.f32.partialorder %v2239_v42, inf }
 0x173   : > { %v952_v50 = vadd.f32 %v2105_v48, %v951_v44  ;;  %v689_v1 = vpop.f32.mrf.mxu0  ;;  %v777_v52 = vpop.f32.mrf.mxu1  ;;  %v1088_v58 = vmul.f32 %v1087_v37, %v2208_v22  ;;  %1567 = vpow2.f32 %v1218_v45  ;;  %v1096_v15 = vmul.f32 %v1562_v27, %v1095_v55 }
 0x174   : > { %v1564_v53 = vpop.eup %1563  ;;  %v888_v33 = vmul.f32 %v864_v61, %v864_v61  ;;  %v690_v60 = vadd.f32 %v2084_v6, %v689_v1  ;;  %v778_v13 = vadd.f32 %v2091_v9, %v777_v52  ;;  %vm1115_vm5 = vcmp.eq.f32.partialorder %v2239_v42, 0.0 }
 0x175   : > { %1243 = vst [vmem:[%s2163_s7 + $0x28] sm:$0xff] %v1564_v53  ;;  %v1090_v57 = vsel %vm1089_vm0, %v2208_v22, %v1088_v58  ;;  %v976_v59 = vmul.f32 %v952_v50, %v952_v50  ;;  %v1097_v3 = vmul.f32 0.5, %v1096_v15  ;;  %v1116_v15 = vand.u32 2147483648, %v2239_v42 }
 0x176   : > { %v1093_v62 = vsel %vm1091_vm1, %v1092_v56, %v1090_v57  ;;  %v904_v63 = vadd.f32 %v888_v33, %v816_v41  ;;  %v713_v4 = vmul.f32 %v690_v60, %v690_v60  ;;  %v801_v14 = vmul.f32 %v778_v13, %v778_v13 }
 0x177   : > { %v1197_v2 = vsub.f32 0.0, %v1093_v62  ;;  %v1098_v0 = vsub.f32 1.5, %v1097_v3 }
 0x178   : > { %v2253_v25 = vadd.f32 %v976_v59, %v904_v63  ;;  %v1566_v16 = vpop.eup %1565  ;;  %v729_v10 = vadd.f32 %v713_v4, %v2055_v11 }
 0x179   : > { %v1220_v24 = vmul.f32 1.442695, %v1197_v2  ;;  %v865_v5 = vpop.f32.mrf.mxu2  ;;  %v1568_v22 = vpop.eup %1567  ;;  %v1107_v26 = vmul.f32 %v1566_v16, %v2239_v42  ;;  %v1099_v30 = vmul.f32 %v1562_v27, %v1098_v0 }
 0x17a   : > { %v953_v40 = vpop.f32.mrf.mxu3  ;;  %1569 = vrsqrt.f32 %v2253_v25  ;;  %1244 = vst [vmem:[%s2163_s7 + $0x30] sm:$0xff] %v1568_v22  ;;  %v866_v38 = vadd.f32 %v2100_v23, %v865_v5  ;;  %v817_v35 = vadd.f32 %v801_v14, %v729_v10  ;;  %vm1125_vm6 = vcmp.eq.f32.partialorder %v2253_v25, inf }
 0x17b   : > { %v692_v12 = vpop.f32.mrf.mxu0  ;;  %v780_v51 = vpop.f32.mrf.mxu1  ;;  %1571 = vpow2.f32 %v1220_v24  ;;  %v1108_v17 = vmul.f32 %v1566_v16, %v1107_v26  ;;  %v954_v18 = vadd.f32 %v2105_v48, %v953_v40  ;;  %v1100_v20 = vmul.f32 %v1099_v30, %v2226_v39 }
 0x17c   : > { %v693_v19 = vadd.f32 %v2084_v6, %v692_v12  ;;  %v781_v11 = vadd.f32 %v2091_v9, %v780_v51  ;;  %v889_v28 = vmul.f32 %v866_v38, %v866_v38  ;;  %vm1127_vm7 = vcmp.eq.f32.partialorder %v2253_v25, 0.0 }
 0x17d   : > { %v1109_v7 = vmul.f32 0.5, %v1108_v17  ;;  %v1102_v29 = vsel %vm1101_vm2, %v2226_v39, %v1100_v20  ;;  %v977_v37 = vmul.f32 %v954_v18, %v954_v18  ;;  %v1128_v20 = vand.u32 2147483648, %v2253_v25 }
 0x17e   : > { %v714_v36 = vmul.f32 %v693_v19, %v693_v19  ;;  %v1105_v47 = vsel %vm1103_vm3, %v1104_v21, %v1102_v29  ;;  %v905_v46 = vadd.f32 %v889_v28, %v817_v35  ;;  %v802_v61 = vmul.f32 %v781_v11, %v781_v11 }
 0x17f   : > { %v1110_v34 = vsub.f32 1.5, %v1109_v7  ;;  %v1198_v44 = vsub.f32 0.0, %v1105_v47 }
 0x180   : > { %v1570_v32 = vpop.eup %1569  ;;  %v730_v45 = vadd.f32 %v714_v36, %v2061_v31  ;;  %v2272_v53 = vadd.f32 %v977_v37, %v905_v46 }
 0x181   : > { %v1572_v43 = vpop.eup %1571  ;;  %v1119_v27 = vmul.f32 %v1570_v32, %v2253_v25  ;;  %v868_v50 = vpop.f32.mrf.mxu2  ;;  %v1111_v52 = vmul.f32 %v1566_v16, %v1110_v34  ;;  %v1222_v56 = vmul.f32 1.442695, %v1198_v44 }
 0x182   : > { %v956_v1 = vpop.f32.mrf.mxu3  ;;  %1245 = vst [vmem:[%s2163_s7 + $0x38] sm:$0xff] %v1572_v43  ;;  %v869_v39 = vadd.f32 %v2100_v23, %v868_v50  ;;  %1573 = vrsqrt.f32 %v2272_v53  ;;  %v818_v60 = vadd.f32 %v802_v61, %v730_v45  ;;  %vm1137_vm8 = vcmp.eq.f32.partialorder %v2272_v53, inf }
 0x183   : > { %v694_v58 = vpop.f32.mrf.mxu0  ;;  %v782_v55 = vpop.f32.mrf.mxu1  ;;  %v1120_v41 = vmul.f32 %v1570_v32, %v1119_v27  ;;  %v957_v33 = vadd.f32 %v2105_v48, %v956_v1  ;;  %v1112_v31 = vmul.f32 %v1111_v52, %v2239_v42  ;;  %1575 = vpow2.f32 %v1222_v56 }
 0x184   : > { %v695_v57 = vadd.f32 %v2084_v6, %v694_v58  ;;  %v890_v62 = vmul.f32 %v869_v39, %v869_v39  ;;  %v783_v4 = vadd.f32 %v2091_v9, %v782_v55  ;;  %vm1139_vm9 = vcmp.eq.f32.partialorder %v2272_v53, 0.0 }
 0x185   : > { %v1121_v59 = vmul.f32 0.5, %v1120_v41  ;;  %v1114_v63 = vsel %vm1113_vm4, %v2239_v42, %v1112_v31  ;;  %v978_v2 = vmul.f32 %v957_v33, %v957_v33 }
 0x186   : > { %v715_v3 = vmul.f32 %v695_v57, %v695_v57  ;;  %v1117_v13 = vsel %vm1115_vm5, %v1116_v15, %v1114_v63  ;;  %v906_v24 = vadd.f32 %v890_v62, %v818_v60  ;;  %v803_v30 = vmul.f32 %v783_v4, %v783_v4 }
 0x187   : > { %v1122_v16 = vsub.f32 1.5, %v1121_v59  ;;  %v1199_v0 = vsub.f32 0.0, %v1117_v13  ;;  %v1140_v15 = vand.u32 2147483648, %v2272_v53 }
 0x188   : > { %v731_v5 = vadd.f32 %v715_v3, %v2075_v54  ;;  %v2286_v22 = vadd.f32 %v978_v2, %v906_v24  ;;  %v1574_v12 = vpop.eup %1573 }
 0x189   : > { %v1123_v40 = vmul.f32 %v1570_v32, %v1122_v16  ;;  %v870_v26 = vpop.f32.mrf.mxu2  ;;  %v1224_v51 = vmul.f32 1.442695, %v1199_v0  ;;  %v1576_v18 = vpop.eup %1575  ;;  %v1131_v54 = vmul.f32 %v1574_v12, %v2272_v53 }
 0x18a   : > { %v958_v10 = vpop.f32.mrf.mxu3  ;;  %v871_v42 = vadd.f32 %v2100_v23, %v870_v26  ;;  %1577 = vrsqrt.f32 %v2286_v22  ;;  %1246 = vst [vmem:[%s2163_s7 + $0x40] sm:$0xff] %v1576_v18  ;;  %v819_v21 = vadd.f32 %v803_v30, %v731_v5  ;;  %vm1149_vm10 = vcmp.eq.f32.partialorder %v2286_v22, inf }
 0x18b   : > { %v959_v14 = vadd.f32 %v2105_v48, %v958_v10  ;;  %v697_v17 = vpop.f32.mrf.mxu0  ;;  %v785_v38 = vpop.f32.mrf.mxu1  ;;  %v1124_v19 = vmul.f32 %v1123_v40, %v2253_v25  ;;  %1579 = vpow2.f32 %v1224_v51  ;;  %v1132_v35 = vmul.f32 %v1574_v12, %v1131_v54 }
 0x18c   : > { %v891_v11 = vmul.f32 %v871_v42, %v871_v42  ;;  %v698_v28 = vadd.f32 %v2084_v6, %v697_v17  ;;  %v786_v47 = vadd.f32 %v2091_v9, %v785_v38  ;;  %v1152_v18 = vand.u32 2147483648, %v2286_v22 }
 0x18d   : > { %v1126_v7 = vsel %vm1125_vm6, %v2253_v25, %v1124_v19  ;;  %v979_v32 = vmul.f32 %v959_v14, %v959_v14  ;;  %v1133_v46 = vmul.f32 0.5, %v1132_v35  ;;  %vm1151_vm11 = vcmp.eq.f32.partialorder %v2286_v22, 0.0 }
 0x18e   : > { %v1129_v36 = vsel %vm1127_vm7, %v1128_v20, %v1126_v7  ;;  %v907_v29 = vadd.f32 %v891_v11, %v819_v21  ;;  %v716_v37 = vmul.f32 %v698_v28, %v698_v28  ;;  %v804_v25 = vmul.f32 %v786_v47, %v786_v47 }
 0x18f   : > { %v1200_v34 = vsub.f32 0.0, %v1129_v36  ;;  %v1134_v45 = vsub.f32 1.5, %v1133_v46 }
 0x190   : > { %v2300_v43 = vadd.f32 %v979_v32, %v907_v29  ;;  %v1578_v44 = vpop.eup %1577  ;;  %v732_v61 = vadd.f32 %v716_v37, %v2086_v8 }
 0x191   : > { %v1226_v27 = vmul.f32 1.442695, %v1200_v34  ;;  %v873_v50 = vpop.f32.mrf.mxu2  ;;  %v1580_v52 = vpop.eup %1579  ;;  %v1143_v39 = vmul.f32 %v1578_v44, %v2286_v22  ;;  %v1135_v55 = vmul.f32 %v1574_v12, %v1134_v45 }
 0x192   : > { %v961_v1 = vpop.f32.mrf.mxu3  ;;  %1581 = vrsqrt.f32 %v2300_v43  ;;  %1247 = vst [vmem:[%s2163_s7 + $0x48] sm:$0xff] %v1580_v52  ;;  %v874_v41 = vadd.f32 %v2100_v23, %v873_v50  ;;  %v820_v59 = vadd.f32 %v804_v25, %v732_v61  ;;  %vm1161_vm12 = vcmp.eq.f32.partialorder %v2300_v43, inf }
 0x193   : > { %v699_v58 = vpop.f32.mrf.mxu0  ;;  %1583 = vpow2.f32 %v1226_v27  ;;  %v1144_v56 = vmul.f32 %v1578_v44, %v1143_v39  ;;  %v962_v33 = vadd.f32 %v2105_v48, %v961_v1  ;;  %v787_v8 = vpop.f32.mrf.mxu1  ;;  %v1136_v31 = vmul.f32 %v1135_v55, %v2272_v53 }
 0x194   : > { %v700_v57 = vadd.f32 %v2084_v6, %v699_v58  ;;  %v892_v62 = vmul.f32 %v874_v41, %v874_v41  ;;  %v788_v4 = vadd.f32 %v2091_v9, %v787_v8  ;;  %vm1163_vm13 = vcmp.eq.f32.partialorder %v2300_v43, 0.0 }
 0x195   : > { %v1145_v60 = vmul.f32 0.5, %v1144_v56  ;;  %v980_v63 = vmul.f32 %v962_v33, %v962_v33  ;;  %v1138_v3 = vsel %vm1137_vm8, %v2272_v53, %v1136_v31 }
 0x196   : > { %v717_v2 = vmul.f32 %v700_v57, %v700_v57  ;;  %v1141_v13 = vsel %vm1139_vm9, %v1140_v15, %v1138_v3  ;;  %v908_v24 = vadd.f32 %v892_v62, %v820_v59  ;;  %v805_v9 = vmul.f32 %v788_v4, %v788_v4 }
 0x197   : > { %v1146_v16 = vsub.f32 1.5, %v1145_v60  ;;  %v1201_v5 = vsub.f32 0.0, %v1141_v13 }
 0x198   : > { %v1582_v6 = vpop.eup %1581  ;;  %v733_v26 = vadd.f32 %v717_v2, %v2107_v49  ;;  %v996_v30 = vadd.f32 %v980_v63, %v908_v24 }
 0x199   : > { %v1584_v0 = vpop.eup %1583  ;;  %v1155_v40 = vmul.f32 %v1582_v6, %v2300_v43  ;;  %v875_v10 = vpop.f32.mrf.mxu2  ;;  %v1147_v51 = vmul.f32 %v1578_v44, %v1146_v16  ;;  %v1228_v53 = vmul.f32 1.442695, %v1201_v5 }
 0x19a   : > { %v963_v12 = vpop.f32.mrf.mxu3  ;;  %1248 = vst [vmem:[%s2163_s7 + $0x50] sm:$0xff] %v1584_v0  ;;  %v876_v42 = vadd.f32 %v2100_v23, %v875_v10  ;;  %1585 = vrsqrt.f32 %v996_v30  ;;  %v821_v19 = vadd.f32 %v805_v9, %v733_v26  ;;  %vm1173_vm14 = vcmp.eq.f32.partialorder %v996_v30, inf }
 0x19b   : > { %v1156_v14 = vmul.f32 %v1582_v6, %v1155_v40  ;;  %v964_v17 = vadd.f32 %v2105_v48, %v963_v12  ;;  %v1148_v38 = vmul.f32 %v1147_v51, %v2286_v22  ;;  %1587 = vpow2.f32 %v1228_v53 }
 0x19c   : > { %v893_v54 = vmul.f32 %v876_v42, %v876_v42  ;;  %v1176_v56 = vand.u32 2147483648, %v996_v30  ;;  %vm1175_vm15 = vcmp.eq.f32.partialorder %v996_v30, 0.0 }
 0x19d   : > { %v1157_v49 = vmul.f32 0.5, %v1156_v14  ;;  %v1150_v20 = vsel %vm1149_vm10, %v2286_v22, %v1148_v38  ;;  %v981_v48 = vmul.f32 %v964_v17, %v964_v17  ;;  %v1164_v22 = vand.u32 2147483648, %v2300_v43 }
 0x19e   : > { %v1153_v23 = vsel %vm1151_vm11, %v1152_v18, %v1150_v20  ;;  %v909_v11 = vadd.f32 %v893_v54, %v821_v19 }
 0x19f   : > { %v1158_v21 = vsub.f32 1.5, %v1157_v49  ;;  %v1202_v7 = vsub.f32 0.0, %v1153_v23 }
 0x1a0   : > { %v997_v28 = vadd.f32 %v981_v48, %v909_v11  ;;  %v1586_v36 = vpop.eup %1585 }
 0x1a1   : > { %v1159_v35 = vmul.f32 %v1582_v6, %v1158_v21  ;;  %v1230_v29 = vmul.f32 1.442695, %v1202_v7  ;;  %v1588_v32 = vpop.eup %1587  ;;  %v1167_v34 = vmul.f32 %v1586_v36, %v996_v30 }
 0x1a2   : > { %1589 = vrsqrt.f32 %v997_v28  ;;  %1249 = vst [vmem:[%s2163_s7 + $0x58] sm:$0xff] %v1588_v32  ;;  %vm1185_vm0 = vcmp.eq.f32.partialorder %v997_v28, inf  ;;  %v1188_v62 = vand.u32 2147483648, %v997_v28  ;;  %vm1187_vm1 = vcmp.eq.f32.partialorder %v997_v28, 0.0 }
 0x1a3   : > { %v1160_v47 = vmul.f32 %v1159_v35, %v2300_v43  ;;  %1591 = vpow2.f32 %v1230_v29  ;;  %v1168_v37 = vmul.f32 %v1586_v36, %v1167_v34 }
 0x1a5   : > { %v1162_v46 = vsel %vm1161_vm12, %v2300_v43, %v1160_v47  ;;  %v1169_v45 = vmul.f32 0.5, %v1168_v37 }
 0x1a6   : > { %v1165_v44 = vsel %vm1163_vm13, %v1164_v22, %v1162_v46 }
 0x1a7   : > { %v1203_v27 = vsub.f32 0.0, %v1165_v44  ;;  %v1170_v50 = vsub.f32 1.5, %v1169_v45 }
 0x1a8   : > { %v1590_v61 = vpop.eup %1589 }
 0x1a9   : > { %v1232_v25 = vmul.f32 1.442695, %v1203_v27  ;;  %v1592_v1 = vpop.eup %1591  ;;  %v1179_v52 = vmul.f32 %v1590_v61, %v997_v28  ;;  %v1171_v39 = vmul.f32 %v1586_v36, %v1170_v50 }
 0x1aa   : > { %1250 = vst [vmem:[%s2163_s7 + $0x60] sm:$0xff] %v1592_v1 }
 0x1ab   : > { %1593 = vpow2.f32 %v1232_v25  ;;  %v1180_v58 = vmul.f32 %v1590_v61, %v1179_v52  ;;  %v1172_v55 = vmul.f32 %v1171_v39, %v996_v30 }
 0x1ad   : > { %v1181_v41 = vmul.f32 0.5, %v1180_v58  ;;  %v1174_v33 = vsel %vm1173_vm14, %v996_v30, %v1172_v55 }
 0x1ae   : > { %v1177_v43 = vsel %vm1175_vm15, %v1176_v56, %v1174_v33 }
 0x1af   : > { %v1182_v57 = vsub.f32 1.5, %v1181_v41  ;;  %v1204_v31 = vsub.f32 0.0, %v1177_v43 }
 0x1b1   : > { %v1594_v8 = vpop.eup %1593  ;;  %v1183_v15 = vmul.f32 %v1590_v61, %v1182_v57  ;;  %v1234_v59 = vmul.f32 1.442695, %v1204_v31 }
 0x1b2   : > { %1251 = vst [vmem:[%s2163_s7 + $0x68] sm:$0xff] %v1594_v8 }
 0x1b3   : > { %v1184_v60 = vmul.f32 %v1183_v15, %v997_v28  ;;  %1595 = vpow2.f32 %v1234_v59 }
 0x1b5   : > { %v1186_v63 = vsel %vm1185_vm0, %v997_v28, %v1184_v60 }
 0x1b6   : > { %v1189_v2 = vsel %vm1187_vm1, %v1188_v62, %v1186_v63 }
 0x1b7   : > { %v1205_v3 = vsub.f32 0.0, %v1189_v2 }
 0x1b9   : > { %v1236_v4 = vmul.f32 1.442695, %v1205_v3  ;;  %v1596_v6 = vpop.eup %1595 }
 0x1ba   : > { %1252 = vst [vmem:[%s2163_s7 + $0x70] sm:$0xff] %v1596_v6 }
 0x1bb   : > { %1597 = vpow2.f32 %v1236_v4 }
 0x1be   : > { %1261 = sbr.rel (!%p1753_p4) target bundleno = 482 (0x1e2), region = 36 }
 0x1c1   : > { %v1598_v13 = vpop.eup %1597 }
 0x1c2   : > { %1253 = vst [vmem:[%s2163_s7 + $0x78] sm:$0xff] %v1598_v13 }
 0x1c3   : > { %s2418_s9 = smov (!%p1264_p12, %s1263_s9), 16 }
 0x1c4   : > { %s1463_s10 = sshll.u32 %s2418_s9, 3 }
 0x1c5   : > { %s1267_s11 = ssub.s32 128, %s1463_s10 }
 0x1c6   : > { %s1268_s18 = sshll.u32 %s1267_s11, 4 }
 0x1c7   : > { %1269 = vsyncadd %s2337_s8, %s1268_s18  ;;  %p2346_p13 = scmp.ne.s32.totalorder %s1463_s10, 0  ;;  %s1470_s22 = sshll.u32 %s1680_s15, 7 }
 0x1c8   : > { %s1273_s23 = scalar_lea.hbm %s2406_s3, %s1470_s22  ;;  %s1275_s26 = sshll.u32 %s2163_s7, 4  ;;  %s2355_s26 = int_to_ptr.vmem [resolvable:$true] %s1275_s26 }
 0x1c9   : > { %s1277_s27 = sshll.u32 %s1273_s23, 4  ;;  %s1467_s28 = sshll.u32 %s2418_s9, 7  ;;  %s2357_s27 = int_to_ptr.hbm [resolvable:$true] %s1277_s27 }
 0x1ca   : > { %s1599_s29 = sshra.s32 %s2355_s26, 4  ;;  %s1601_s4 = sshrl.u32 %s1467_s28, 4  ;;  %s1600_s29 = int_to_ptr.vmem [resolvable:$true] %s1599_s29 }
 0x1cb   : > { %s1606_s5 = scalar_lea.vmem %s1600_s29, %s1601_s4  ;;  %s1690_s15 = smov [#allocation2]  }
 0x1cc   : > { %p1607_p0 = scmp.ne.s32.totalorder %s1600_s29, %s1606_s5  ;;  %s1610_s6 = scalar_lea.vmem %s1690_s15, 256 }
 0x1cd   : > { %p1612_p3 = scmp.lt.s32.totalorder %s1610_s6, %s1606_s5 }
 0x1ce   : > { %p1608_p1 = pnand %p1607_p0, %p2346_p13 }
 0x1d0   : > { %p1609_p2 = pneg %p1608_p1 }
 0x1d2   : > { %p1614_p4 = pnand %p1612_p3, %p1609_p2 }
 0x1d4   : > { %1617 = shalt.err (!%p1614_p4)
}
 0x1d5   : > { %s1618_s7 = sshra.s32 %s2357_s27, 4  ;;  %s1629_s22 = scalar_lea.hbm %s2406_s3, 504  ;;  %s1619_s7 = int_to_ptr.hbm [resolvable:$true] %s1618_s7 }
 0x1d6   : > { %s1625_s10 = scalar_lea.hbm %s1619_s7, %s1601_s4  ;;  %p1630_p9 = scmp.lt.s32.totalorder %s1619_s7, %s2406_s3 }
 0x1d7   : > { %p1626_p5 = scmp.ne.s32.totalorder %s1619_s7, %s1625_s10  ;;  %p1631_p10 = scmp.lt.s32.totalorder %s1629_s22, %s1625_s10 }
 0x1d9   : > { %p1627_p6 = pnand %p1626_p5, %p2346_p13  ;;  %p1632_p11 = por %p1631_p10, %p1630_p9 }
 0x1db   : > { %p1628_p7 = pneg %p1627_p6 }
 0x1dd   : > { %p1633_p12 = pnand %p1632_p11, %p1628_p7 }
 0x1df   : > { %1636 = shalt.err (!%p1633_p12)
}
 0x1e0   : > { %s1691_s23 = smov 128   ;;  %s1692_s29 = smov 8  }
 0x1e1   : > { %1283 = dma.vmem_to_hbm [thread:$0]  (%p2346_p13), %s2355_s26, %s1467_s28, %s2357_s27, %s2337_s8, %s1691_s23, %s1691_s23, %s1692_s29  }
 0x1e2 PF: > { %p1476_p0 = scmp.ge.s32.totalorder %s1688_s17, 2  ;;  %s1292_s4 = sand.u32 1, %s1668_s12  }
 0x1e3   : > { %s1293_s5 = scalar_lea.sflag [#allocation3], %s1292_s4 }
 0x1e4   : > { %p1473_p1 = pnand %p1476_p0, %p1760_p8 }
 0x1e6   : > { %p1474_p2 = pneg %p1473_p1 }
 0x1e8   : > { %1663 = dma.done.wait (%p1474_p2), %s1293_s5, 2048  }
 0x1e9   : > { %1665 = vsyncadd (%p1474_p2), %s1293_s5, 4294965248  ;;  %s16_s17 = sadd.s32 1, %s1688_s17   ;;  %s2410_s12 = smov %s1672_s13 }
 0x1ea   : > { %p13_p3 = scmp.ge.s32.totalorder %s16_s17, 6   ;;  %s2411_s13 = smov %s1676_s14 }
 0x1eb   : > { %s2412_s14 = smov %s1766_s25  ;;  %s2413_s15 = smov %s1684_s16 }
 0x1ec   : > { %s2414_s16 = smov %s2416_s20  ;;  %15 = sbr.rel (!%p13_p3) target bundleno = 4 (0x4), region = 80 }
 0x1f1   :  { %1299 = vsyncpa [#allocation3], 1 }
 0x1f2   :  { %1301 = vsyncpa [#allocation3 + $0x1], 1 }

</bundles_post_ra>
